<compile_context>
chip_gen: v5e
topology: v5e:2x2
jax: 0.10.0
libtpu: 0.0.40
codegen_flags: <defaults>
</compile_context>

<pallas_src>
import math

import jax
import jax.numpy as jnp
import numpy as np
from jax.experimental import pallas as pl
from jax.experimental.pallas import tpu as pltpu


# ----------------------------------------------------------------------------
# Positional encoding (host-side glue, same formula as the PyTorch reference).
# ----------------------------------------------------------------------------
def positional_encoding(max_len, emb_dim):
    position = jnp.arange(max_len, dtype=jnp.float32)[:, None]
    div_term = jnp.exp(
        jnp.arange(0, emb_dim, 2, dtype=jnp.float32) * (-math.log(10000.0) / emb_dim)
    )
    pe = jnp.zeros((max_len, emb_dim), dtype=jnp.float32)
    pe = pe.at[:, 0::2].set(jnp.sin(position * div_term))
    pe = pe.at[:, 1::2].set(jnp.cos(position * div_term))
    return pe


# ----------------------------------------------------------------------------
# Shared math helpers
# ----------------------------------------------------------------------------
def _layer_norm(v, g, b, eps=1e-5):
    mu = jnp.mean(v, axis=-1, keepdims=True)
    var = jnp.mean((v - mu) ** 2, axis=-1, keepdims=True)
    return (v - mu) * jax.lax.rsqrt(var + eps) * g + b


# ----------------------------------------------------------------------------
# Fused decoder-stack kernel (all layers, one pallas_call)
# ----------------------------------------------------------------------------
def make_decoder_stack_kernel(num_heads, d_h, bt, S, E, compute_dtype):
    H = num_heads
    scale = 1.0 / math.sqrt(d_h)
    N = bt * S  # batch-flattened rows per grid step

    def cd(a):  # cast matmul operands to the MXU compute dtype (no-op for f32)
        return a.astype(compute_dtype)

    def kernel(x_ref, bias_ref,
               ln1g_ref, ln1b_ref, wqkv_ref, bqkv_ref, wo_ref,
               ln2g_ref, ln2b_ref, w1_ref, b1_ref, w2_ref, b2_ref,
               out_ref):
        l = pl.program_id(1)

        # Layer 0 of each batch tile: seed the activation.  The output block is
        # revisited for every layer (same block index along the layer axis), so
        # it stays resident in VMEM until the batch-tile index changes.
        @pl.when(l == 0)
        def _():
            out_ref[...] = x_ref[...]

        x = out_ref[...].reshape(N, E)      # (bt*S, E) f32 resident activation

        # Hoist the key-pad bias broadcast out of the head loop (JAX does not
        # CSE broadcast_in_dim: doing it inside would emit H broadcasts).
        bias = jnp.broadcast_to(bias_ref[...], (bt, S, S))   # (bt, S_q, S_k)

        # ---- attention sub-block (pre-norm), fused QKV projection ----------
        xn = _layer_norm(x, ln1g_ref[0], ln1b_ref[0])
        qkv = jnp.dot(cd(xn), wqkv_ref[0],
                      preferred_element_type=jnp.float32) + bqkv_ref[0]  # (N, 3E)

        head_outs = []
        for h in range(H):                  # static, unrolled head loop
            # Fold the 1/sqrt(d_h) scale into Q (fewer mults than scaling S).
            q_h = cd(qkv[:, h * d_h:(h + 1) * d_h] * scale).reshape(bt, S, d_h)
            k_h = cd(qkv[:, E + h * d_h:E + (h + 1) * d_h]).reshape(bt, S, d_h)
            v_h = cd(qkv[:, 2 * E + h * d_h:2 * E + (h + 1) * d_h]).reshape(bt, S, d_h)

            s = jnp.einsum("bqd,bkd->bqk", q_h, k_h,
                           preferred_element_type=jnp.float32) + bias
            s_max = jnp.max(s, axis=-1, keepdims=True)
            p = jnp.exp(s - s_max)
            denom = jnp.sum(p, axis=-1, keepdims=True)
            p = p * pl.reciprocal(denom, approx=True)      # divide -> EUP slot

            ctx = jnp.einsum("bqk,bkd->bqd", cd(p), v_h,
                             preferred_element_type=jnp.float32)  # (bt, S, d_h)
            head_outs.append(ctx.reshape(N, d_h))

        concat = jnp.concatenate(head_outs, axis=-1)                 # (N, E)
        attn = jnp.dot(cd(concat), wo_ref[0], preferred_element_type=jnp.float32)
        x1 = x + attn                                                # residual

        # ---- MLP sub-block (pre-norm) ---------------------------------------
        xn2 = _layer_norm(x1, ln2g_ref[0], ln2b_ref[0])
        h1 = jnp.maximum(
            jnp.dot(cd(xn2), w1_ref[0], preferred_element_type=jnp.float32)
            + b1_ref[0],
            0.0,
        )
        mlp = jnp.dot(cd(h1), w2_ref[0], preferred_element_type=jnp.float32) + b2_ref[0]

        out_ref[...] = (x1 + mlp).reshape(bt, S, E)                  # residual

    return kernel


def decoder_stack_call(x, mask_bias, stacked, num_heads, *,
                       compute_dtype=jnp.float32, batch_block=None):
    """x: (B, S, E) f32;  mask_bias: (B, 1, S) f32 additive bias (-1e30 at pads)."""
    B, S, E = x.shape
    L = stacked["wqkv"].shape[0]
    d_h = E // num_heads
    bt = batch_block or B
    assert B % bt == 0, "batch_block must divide the batch size"

    kernel = make_decoder_stack_kernel(num_heads, d_h, bt, S, E, compute_dtype)

    weight_order = ["ln1_g", "ln1_b", "wqkv", "bqkv", "wo",
                    "ln2_g", "ln2_b", "w1", "b1", "w2", "b2"]

    def wspec(arr):
        # One layer's weights per grid step, selected by the layer index.
        return pl.BlockSpec((1,) + arr.shape[1:], lambda b, l: (l, 0, 0))

    in_specs = [
        pl.BlockSpec((bt, S, E), lambda b, l: (b, 0, 0)),   # activations
        pl.BlockSpec((bt, 1, S), lambda b, l: (b, 0, 0)),   # additive pad bias
    ] + [wspec(stacked[name]) for name in weight_order]

    return pl.pallas_call(
        kernel,
        out_shape=jax.ShapeDtypeStruct((B, S, E), jnp.float32),
        grid=(B // bt, L),
        in_specs=in_specs,
        out_specs=pl.BlockSpec((bt, S, E), lambda b, l: (b, 0, 0)),
        compiler_params=pltpu.CompilerParams(
            # batch tiles are independent -> "parallel" (v7x megacore sharding);
            # the layer axis carries the resident activation -> "arbitrary".
            dimension_semantics=("parallel", "arbitrary"),
        ),
    )(x, mask_bias, *[stacked[name] for name in weight_order])


# ----------------------------------------------------------------------------
# Final LayerNorm + classifier head kernel (last-token hidden states only)
# ----------------------------------------------------------------------------
def head_kernel(x_ref, g_ref, b_ref, wc_ref, bc_ref, out_ref):
    xn = _layer_norm(x_ref[...], g_ref[...], b_ref[...])
    out_ref[...] = (
        jnp.dot(xn, wc_ref[...], preferred_element_type=jnp.float32) + bc_ref[...]
    )


def head_call(last_hidden, params):
    B, E = last_hidden.shape
    C = params["wc"].shape[1]
    return pl.pallas_call(
        head_kernel,
        out_shape=jax.ShapeDtypeStruct((B, C), jnp.float32),
    )(last_hidden, params["lnf_g"], params["lnf_b"], params["wc"], params["bc"])


# ----------------------------------------------------------------------------
# Parameter stacking (per-layer weights -> leading layer axis, optional bf16)
# ----------------------------------------------------------------------------
def stack_block_params(blocks, compute_dtype):
    def stack(name):
        return jnp.stack([blk[name] for blk in blocks], axis=0)

    wqkv = jnp.stack(
        [jnp.concatenate([blk["wq"], blk["wk"], blk["wv"]], axis=1) for blk in blocks],
        axis=0)                                            # (L, E, 3E)
    bqkv = jnp.stack(
        [jnp.concatenate([blk["bq"], blk["bk"], blk["bv"]], axis=1) for blk in blocks],
        axis=0)                                            # (L, 1, 3E)

    return dict(
        ln1_g=stack("ln1_g"), ln1_b=stack("ln1_b"),
        wqkv=wqkv.astype(compute_dtype), bqkv=bqkv,
        wo=stack("wo").astype(compute_dtype),
        ln2_g=stack("ln2_g"), ln2_b=stack("ln2_b"),
        w1=stack("w1").astype(compute_dtype), b1=stack("b1"),
        w2=stack("w2").astype(compute_dtype), b2=stack("b2"),
    )


# ----------------------------------------------------------------------------
# Full forward (glue + kernels)
# ----------------------------------------------------------------------------
def model_forward(tokens, pad_mask, params, *, compute_dtype=jnp.float32,
                  batch_block=None):
    """tokens: (B, S) int32;  pad_mask: (B, S) bool, True = padding."""
    B, S = tokens.shape
    E = params["emb"].shape[1]

    x_emb = params["emb"][tokens] * math.sqrt(E)              # (B, S, E)
    hidden = x_emb + params["pos"][:S][None, :, :]            # pos-dropout = id
    mask_bias = pad_mask.astype(jnp.float32).reshape(B, 1, S) * jnp.float32(-1e30)

    stacked = stack_block_params(params["blocks"], compute_dtype)
    hidden = decoder_stack_call(hidden, mask_bias, stacked, params["num_heads"],
                                compute_dtype=compute_dtype,
                                batch_block=batch_block)

    seq_lens = jnp.sum(~pad_mask, axis=1)
    last_idx = jnp.clip(seq_lens - 1, 0, None)
    last_hidden = hidden[jnp.arange(B), last_idx, :]          # (B, E) glue gather

    return head_call(last_hidden, params)                     # (B, num_classes)


# ----------------------------------------------------------------------------
# Pure-JAX reference (same math, no Pallas) for verification.
# ----------------------------------------------------------------------------
def ref_forward(tokens, pad_mask, params):
    B, S = tokens.shape
    E = params["emb"].shape[1]
    H = params["num_heads"]
    d_h = E // H
    x = params["emb"][tokens] * math.sqrt(E) + params["pos"][:S][None]
    mask_f = pad_mask.astype(jnp.float32).reshape(B, 1, S)

    for p in params["blocks"]:
        xn = _layer_norm(x, p["ln1_g"], p["ln1_b"])
        q = xn @ p["wq"] + p["bq"]
        k = xn @ p["wk"] + p["bk"]
        v = xn @ p["wv"] + p["bv"]
        outs = []
        for h in range(H):
            sl = slice(h * d_h, (h + 1) * d_h)
            s = jnp.einsum("bqd,bkd->bqk", q[..., sl], k[..., sl]) / math.sqrt(d_h)
            s = jnp.where(mask_f > 0.5, jnp.float32(-1e30), s)
            pzz = jax.nn.softmax(s, axis=-1)
            outs.append(jnp.einsum("bqk,bkd->bqd", pzz, v[..., sl]))
        attn = jnp.concatenate(outs, axis=-1) @ p["wo"]
        x = x + attn
        xn2 = _layer_norm(x, p["ln2_g"], p["ln2_b"])
        mlp = jnp.maximum(xn2 @ p["w1"] + p["b1"], 0.0) @ p["w2"] + p["b2"]
        x = x + mlp

    seq_lens = jnp.sum(~pad_mask, axis=1)
    last_idx = jnp.clip(seq_lens - 1, 0, None)
    last_hidden = x[jnp.arange(B), last_idx, :]
    last_hidden = _layer_norm(last_hidden, params["lnf_g"], params["lnf_b"])
    return last_hidden @ params["wc"] + params["bc"]


# ----------------------------------------------------------------------------
# Deterministic parameter initialization (mirrors the PyTorch init scheme).
# ----------------------------------------------------------------------------
def init_params(key, vocab_size, emb_dim, num_heads, num_blocks,
                context_size, num_classes, pad_idx, hidden_dim=None):
    hidden_dim = hidden_dim or 4 * emb_dim
    d_h = emb_dim // num_heads
    keys = iter(jax.random.split(key, 8 * num_blocks + 8))

    emb = 0.02 * jax.random.normal(next(keys), (vocab_size, emb_dim), jnp.float32)
    emb = emb.at[pad_idx].set(0.0)

    blocks = []
    xav_qkv = math.sqrt(6.0 / (emb_dim + d_h))
    xav_o = math.sqrt(6.0 / (emb_dim + emb_dim))
    for _ in range(num_blocks):
        blk = dict(
            ln1_g=jnp.ones((1, emb_dim), jnp.float32),
            ln1_b=jnp.zeros((1, emb_dim), jnp.float32),
            wq=jax.random.uniform(next(keys), (emb_dim, emb_dim), jnp.float32,
                                  -xav_qkv, xav_qkv),
            bq=jnp.zeros((1, emb_dim), jnp.float32),
            wk=jax.random.uniform(next(keys), (emb_dim, emb_dim), jnp.float32,
                                  -xav_qkv, xav_qkv),
            bk=jnp.zeros((1, emb_dim), jnp.float32),
            wv=jax.random.uniform(next(keys), (emb_dim, emb_dim), jnp.float32,
                                  -xav_qkv, xav_qkv),
            bv=jnp.zeros((1, emb_dim), jnp.float32),
            wo=jax.random.uniform(next(keys), (emb_dim, emb_dim), jnp.float32,
                                  -xav_o, xav_o),
            ln2_g=jnp.ones((1, emb_dim), jnp.float32),
            ln2_b=jnp.zeros((1, emb_dim), jnp.float32),
            w1=0.02 * jax.random.normal(next(keys), (emb_dim, hidden_dim), jnp.float32),
            b1=jnp.zeros((1, hidden_dim), jnp.float32),
            w2=0.02 * jax.random.normal(next(keys), (hidden_dim, emb_dim), jnp.float32),
            b2=jnp.zeros((1, emb_dim), jnp.float32),
        )
        blocks.append(blk)

    params = dict(
        num_heads=num_heads,
        emb=emb,
        pos=positional_encoding(context_size, emb_dim),
        blocks=blocks,
        lnf_g=jnp.ones((1, emb_dim), jnp.float32),
        lnf_b=jnp.zeros((1, emb_dim), jnp.float32),
        wc=0.02 * jax.random.normal(next(keys), (emb_dim, num_classes), jnp.float32),
        bc=jnp.zeros((1, num_classes), jnp.float32),
    )
    return params


# ----------------------------------------------------------------------------
if __name__ == "__main__":
    VOCAB, EMB, HEADS, BLOCKS = 50, 32, 4, 2
    CONTEXT, CLASSES, PAD_IDX = 16, 5, 0
    B, S = 2, 8

    key = jax.random.PRNGKey(0)
    k_params, k_tok = jax.random.split(key)
    params = init_params(k_params, VOCAB, EMB, HEADS, BLOCKS, CONTEXT, CLASSES, PAD_IDX)

    tokens = jax.random.randint(k_tok, (B, S), 1, VOCAB, dtype=jnp.int32)
    lengths = jnp.array([S, S - 2], dtype=jnp.int32)
    pad_mask = jnp.arange(S)[None, :] >= lengths[:, None]      # True = padding
    tokens = jnp.where(pad_mask, PAD_IDX, tokens)

    ref = jax.block_until_ready(ref_forward(tokens, pad_mask, params))

    # f32 compute path: matches the module's math (only the approximate EUP
    # reciprocal in the softmax denominator differs from exact division).
    logits = model_forward(tokens, pad_mask, params, compute_dtype=jnp.float32)
    logits = jax.block_until_ready(logits)
    np.testing.assert_allclose(np.asarray(logits), np.asarray(ref),
                               rtol=2e-3, atol=2e-3)
    assert logits.shape == (B, CLASSES)

    # bf16 matmul-operand path (MXU fast path, half the weight HBM/VMEM
    # traffic); accumulation, residual stream and LayerNorm stats stay f32.
    logits_bf16 = model_forward(tokens, pad_mask, params,
                                compute_dtype=jnp.bfloat16)
    logits_bf16 = jax.block_until_ready(logits_bf16)
    np.testing.assert_allclose(np.asarray(logits_bf16), np.asarray(ref),
                               rtol=5e-2, atol=5e-2)

    print("KERNEL_OK")
</pallas_src>

<mosaic_0001>
module attributes {stable_mosaic.version = 11 : i64} {
  func.func @kernel(%arg0: i32, %arg1: i32, %arg2: memref<2x8x32xf32, #tpu.memory_space<vmem>>, %arg3: memref<2x1x8xf32, #tpu.memory_space<vmem>>, %arg4: memref<1x1x32xf32, #tpu.memory_space<vmem>>, %arg5: memref<1x1x32xf32, #tpu.memory_space<vmem>>, %arg6: memref<1x32x96xf32, #tpu.memory_space<vmem>>, %arg7: memref<1x1x96xf32, #tpu.memory_space<vmem>>, %arg8: memref<1x32x32xf32, #tpu.memory_space<vmem>>, %arg9: memref<1x1x32xf32, #tpu.memory_space<vmem>>, %arg10: memref<1x1x32xf32, #tpu.memory_space<vmem>>, %arg11: memref<1x32x128xf32, #tpu.memory_space<vmem>>, %arg12: memref<1x1x128xf32, #tpu.memory_space<vmem>>, %arg13: memref<1x128x32xf32, #tpu.memory_space<vmem>>, %arg14: memref<1x1x32xf32, #tpu.memory_space<vmem>>, %arg15: memref<2x8x32xf32, #tpu.memory_space<vmem>>) attributes {dimension_semantics = [#tpu.dimension_semantics<parallel>, #tpu.dimension_semantics<arbitrary>], iteration_bounds = array<i64: 1, 2>, scalar_prefetch = 0 : i64, scratch_operands = 0 : i64, tpu.core_type = #tpu.core_type<tc>, window_params = [{transform_indices = @transform_0, window_bounds = array<i64: 2, 8, 32>}, {transform_indices = @transform_1, window_bounds = array<i64: 2, 1, 8>}, {transform_indices = @transform_2, window_bounds = array<i64: 1, 1, 32>}, {transform_indices = @transform_3, window_bounds = array<i64: 1, 1, 32>}, {transform_indices = @transform_4, window_bounds = array<i64: 1, 32, 96>}, {transform_indices = @transform_5, window_bounds = array<i64: 1, 1, 96>}, {transform_indices = @transform_6, window_bounds = array<i64: 1, 32, 32>}, {transform_indices = @transform_7, window_bounds = array<i64: 1, 1, 32>}, {transform_indices = @transform_8, window_bounds = array<i64: 1, 1, 32>}, {transform_indices = @transform_9, window_bounds = array<i64: 1, 32, 128>}, {transform_indices = @transform_10, window_bounds = array<i64: 1, 1, 128>}, {transform_indices = @transform_11, window_bounds = array<i64: 1, 128, 32>}, {transform_indices = @transform_12, window_bounds = array<i64: 1, 1, 32>}, {transform_indices = @transform_13, window_bounds = array<i64: 2, 8, 32>}]} {
    %c0_i32 = arith.constant 0 : i32
    %0 = arith.cmpi eq, %arg1, %c0_i32 : i32
    %1 = arith.extui %0 : i1 to i32
    %c0_i32_0 = arith.constant 0 : i32
    %2 = arith.cmpi ne, %1, %c0_i32_0 : i32
    scf.if %2 {
      %c0_76 = arith.constant 0 : index
      %c0_77 = arith.constant 0 : index
      %c0_78 = arith.constant 0 : index
      %179 = vector.load %arg2[%c0_76, %c0_77, %c0_78] : memref<2x8x32xf32, #tpu.memory_space<vmem>>, vector<2x8x32xf32>
      %c0_79 = arith.constant 0 : index
      %c0_80 = arith.constant 0 : index
      %c0_81 = arith.constant 0 : index
      %180 = vector.load %arg15[%c0_79, %c0_80, %c0_81] : memref<2x8x32xf32, #tpu.memory_space<vmem>>, vector<2x8x32xf32>
      tpu.vector_store %arg15[%c0_79, %c0_80, %c0_81], %179 {strides = array<i32>} : memref<2x8x32xf32, #tpu.memory_space<vmem>>, vector<2x8x32xf32>,
    } else {
    }
    %c0 = arith.constant 0 : index
    %c0_1 = arith.constant 0 : index
    %c0_2 = arith.constant 0 : index
    %3 = vector.load %arg15[%c0, %c0_1, %c0_2] : memref<2x8x32xf32, #tpu.memory_space<vmem>>, vector<2x8x32xf32>
    %4 = vector.shape_cast %3 : vector<2x8x32xf32> to vector<16x32xf32>
    %c0_3 = arith.constant 0 : index
    %c0_4 = arith.constant 0 : index
    %c0_5 = arith.constant 0 : index
    %5 = vector.load %arg3[%c0_3, %c0_4, %c0_5] : memref<2x1x8xf32, #tpu.memory_space<vmem>>, vector<2x1x8xf32>
    %6 = vector.shape_cast %5 : vector<2x1x8xf32> to vector<2x1x8xf32>
    %7 = vector.broadcast %6 : vector<2x1x8xf32> to vector<2x8x8xf32>
    %c0_6 = arith.constant 0 : index
    %c0_7 = arith.constant 0 : index
    %c0_8 = arith.constant 0 : index
    %8 = vector.load %arg4[%c0_6, %c0_7, %c0_8] : memref<1x1x32xf32, #tpu.memory_space<vmem>>, vector<1x1x32xf32>
    %9 = vector.shape_cast %8 : vector<1x1x32xf32> to vector<1x32xf32>
    %c0_9 = arith.constant 0 : index
    %c0_10 = arith.constant 0 : index
    %c0_11 = arith.constant 0 : index
    %10 = vector.load %arg5[%c0_9, %c0_10, %c0_11] : memref<1x1x32xf32, #tpu.memory_space<vmem>>, vector<1x1x32xf32>
    %11 = vector.shape_cast %10 : vector<1x1x32xf32> to vector<1x32xf32>
    %cst = arith.constant dense<0.000000e+00> : vector<16xf32>
    %12 = vector.multi_reduction <add>, %4, %cst [1] : vector<16x32xf32> to vector<16xf32>
    %13 = vector.shape_cast %12 : vector<16xf32> to vector<16x1xf32>
    %cst_12 = arith.constant 3.200000e+01 : f32
    %14 = vector.broadcast %cst_12 : f32 to vector<16x1xf32>
    %15 = arith.divf %13, %14 : vector<16x1xf32>
    %16 = vector.broadcast %15 : vector<16x1xf32> to vector<16x32xf32>
    %17 = arith.subf %4, %16 : vector<16x32xf32>
    %18 = arith.mulf %17, %17 : vector<16x32xf32>
    %cst_13 = arith.constant dense<0.000000e+00> : vector<16xf32>
    %19 = vector.multi_reduction <add>, %18, %cst_13 [1] : vector<16x32xf32> to vector<16xf32>
    %20 = vector.shape_cast %19 : vector<16xf32> to vector<16x1xf32>
    %cst_14 = arith.constant 3.200000e+01 : f32
    %21 = vector.broadcast %cst_14 : f32 to vector<16x1xf32>
    %22 = arith.divf %20, %21 : vector<16x1xf32>
    %23 = vector.broadcast %15 : vector<16x1xf32> to vector<16x32xf32>
    %24 = arith.subf %4, %23 : vector<16x32xf32>
    %cst_15 = arith.constant 9.99999974E-6 : f32
    %25 = vector.broadcast %cst_15 : f32 to vector<16x1xf32>
    %26 = arith.addf %22, %25 : vector<16x1xf32>
    %27 = math.rsqrt %26 : vector<16x1xf32>
    %28 = vector.broadcast %27 : vector<16x1xf32> to vector<16x32xf32>
    %29 = arith.mulf %24, %28 : vector<16x32xf32>
    %30 = vector.broadcast %9 : vector<1x32xf32> to vector<16x32xf32>
    %31 = arith.mulf %29, %30 : vector<16x32xf32>
    %32 = vector.broadcast %11 : vector<1x32xf32> to vector<16x32xf32>
    %33 = arith.addf %31, %32 : vector<16x32xf32>
    %c0_16 = arith.constant 0 : index
    %c0_17 = arith.constant 0 : index
    %c0_18 = arith.constant 0 : index
    %34 = vector.load %arg6[%c0_16, %c0_17, %c0_18] : memref<1x32x96xf32, #tpu.memory_space<vmem>>, vector<1x32x96xf32>
    %35 = vector.shape_cast %34 : vector<1x32x96xf32> to vector<32x96xf32>
    %cst_19 = arith.constant dense<0.000000e+00> : vector<16x96xf32>
    %36 = tpu.matmul %33, %35, %cst_19 {dimension_numbers = #tpu.dot_dimension_numbers<[1], [0], [0], [1], [0, 0, 1, 1], [], []>} : vector<16x32xf32>, vector<32x96xf32>, vector<16x96xf32> -> vector<16x96xf32>
    %c0_20 = arith.constant 0 : index
    %c0_21 = arith.constant 0 : index
    %c0_22 = arith.constant 0 : index
    %37 = vector.load %arg7[%c0_20, %c0_21, %c0_22] : memref<1x1x96xf32, #tpu.memory_space<vmem>>, vector<1x1x96xf32>
    %38 = vector.shape_cast %37 : vector<1x1x96xf32> to vector<1x96xf32>
    %39 = vector.broadcast %38 : vector<1x96xf32> to vector<16x96xf32>
    %40 = arith.addf %36, %39 : vector<16x96xf32>
    %41 = vector.extract_strided_slice %40 {offsets = [0, 0], sizes = [16, 8], strides = [1, 1]} : vector<16x96xf32> to vector<16x8xf32>
    %cst_23 = arith.constant 0.353553385 : f32
    %42 = vector.broadcast %cst_23 : f32 to vector<16x8xf32>
    %43 = arith.mulf %41, %42 : vector<16x8xf32>
    %44 = vector.shape_cast %43 : vector<16x8xf32> to vector<2x8x8xf32>
    %45 = vector.extract_strided_slice %40 {offsets = [0, 32], sizes = [16, 8], strides = [1, 1]} : vector<16x96xf32> to vector<16x8xf32>
    %46 = vector.shape_cast %45 : vector<16x8xf32> to vector<2x8x8xf32>
    %47 = vector.extract_strided_slice %40 {offsets = [0, 64], sizes = [16, 8], strides = [1, 1]} : vector<16x96xf32> to vector<16x8xf32>
    %48 = vector.shape_cast %47 : vector<16x8xf32> to vector<2x8x8xf32>
    "tpu.trace_start"() <{level = 10 : i32, message = "bqd,bkd->bqk"}> : () -> ()
    %cst_24 = arith.constant dense<0.000000e+00> : vector<2x8x8xf32>
    %49 = tpu.matmul %44, %46, %cst_24 {dimension_numbers = #tpu.dot_dimension_numbers<[2], [2], [1], [1], [0, 0, 0, 1, 1, 1], [0], [0]>} : vector<2x8x8xf32>, vector<2x8x8xf32>, vector<2x8x8xf32> -> vector<2x8x8xf32>
    "tpu.trace_stop"() : () -> ()
    %50 = arith.addf %49, %7 : vector<2x8x8xf32>
    %cst_25 = arith.constant dense<0xFF800000> : vector<2x8xf32>
    %51 = vector.multi_reduction <maximumf>, %50, %cst_25 [2] : vector<2x8x8xf32> to vector<2x8xf32>
    %52 = vector.shape_cast %51 : vector<2x8xf32> to vector<2x8x1xf32>
    %53 = vector.broadcast %52 : vector<2x8x1xf32> to vector<2x8x8xf32>
    %54 = arith.subf %50, %53 : vector<2x8x8xf32>
    %55 = math.exp %54 : vector<2x8x8xf32>
    %cst_26 = arith.constant dense<0.000000e+00> : vector<2x8xf32>
    %56 = vector.multi_reduction <add>, %55, %cst_26 [2] : vector<2x8x8xf32> to vector<2x8xf32>
    %57 = vector.shape_cast %56 : vector<2x8xf32> to vector<2x8x1xf32>
    %58 = tpu.reciprocal %57 {approx = true} : vector<2x8x1xf32> -> vector<2x8x1xf32>
    %59 = vector.broadcast %58 : vector<2x8x1xf32> to vector<2x8x8xf32>
    %60 = arith.mulf %55, %59 : vector<2x8x8xf32>
    "tpu.trace_start"() <{level = 10 : i32, message = "bqk,bkd->bqd"}> : () -> ()
    %cst_27 = arith.constant dense<0.000000e+00> : vector<2x8x8xf32>
    %61 = tpu.matmul %60, %48, %cst_27 {dimension_numbers = #tpu.dot_dimension_numbers<[2], [1], [1], [2], [0, 0, 0, 1, 1, 2], [0], [0]>} : vector<2x8x8xf32>, vector<2x8x8xf32>, vector<2x8x8xf32> -> vector<2x8x8xf32>
    "tpu.trace_stop"() : () -> ()
    %62 = vector.shape_cast %61 : vector<2x8x8xf32> to vector<16x8xf32>
    %63 = vector.extract_strided_slice %40 {offsets = [0, 8], sizes = [16, 8], strides = [1, 1]} : vector<16x96xf32> to vector<16x8xf32>
    %cst_28 = arith.constant 0.353553385 : f32
    %64 = vector.broadcast %cst_28 : f32 to vector<16x8xf32>
    %65 = arith.mulf %63, %64 : vector<16x8xf32>
    %66 = vector.shape_cast %65 : vector<16x8xf32> to vector<2x8x8xf32>
    %67 = vector.extract_strided_slice %40 {offsets = [0, 40], sizes = [16, 8], strides = [1, 1]} : vector<16x96xf32> to vector<16x8xf32>
    %68 = vector.shape_cast %67 : vector<16x8xf32> to vector<2x8x8xf32>
    %69 = vector.extract_strided_slice %40 {offsets = [0, 72], sizes = [16, 8], strides = [1, 1]} : vector<16x96xf32> to vector<16x8xf32>
    %70 = vector.shape_cast %69 : vector<16x8xf32> to vector<2x8x8xf32>
    "tpu.trace_start"() <{level = 10 : i32, message = "bqd,bkd->bqk"}> : () -> ()
    %cst_29 = arith.constant dense<0.000000e+00> : vector<2x8x8xf32>
    %71 = tpu.matmul %66, %68, %cst_29 {dimension_numbers = #tpu.dot_dimension_numbers<[2], [2], [1], [1], [0, 0, 0, 1, 1, 1], [0], [0]>} : vector<2x8x8xf32>, vector<2x8x8xf32>, vector<2x8x8xf32> -> vector<2x8x8xf32>
    "tpu.trace_stop"() : () -> ()
    %72 = arith.addf %71, %7 : vector<2x8x8xf32>
    %cst_30 = arith.constant dense<0xFF800000> : vector<2x8xf32>
    %73 = vector.multi_reduction <maximumf>, %72, %cst_30 [2] : vector<2x8x8xf32> to vector<2x8xf32>
    %74 = vector.shape_cast %73 : vector<2x8xf32> to vector<2x8x1xf32>
    %75 = vector.broadcast %74 : vector<2x8x1xf32> to vector<2x8x8xf32>
    %76 = arith.subf %72, %75 : vector<2x8x8xf32>
    %77 = math.exp %76 : vector<2x8x8xf32>
    %cst_31 = arith.constant dense<0.000000e+00> : vector<2x8xf32>
    %78 = vector.multi_reduction <add>, %77, %cst_31 [2] : vector<2x8x8xf32> to vector<2x8xf32>
    %79 = vector.shape_cast %78 : vector<2x8xf32> to vector<2x8x1xf32>
    %80 = tpu.reciprocal %79 {approx = true} : vector<2x8x1xf32> -> vector<2x8x1xf32>
    %81 = vector.broadcast %80 : vector<2x8x1xf32> to vector<2x8x8xf32>
    %82 = arith.mulf %77, %81 : vector<2x8x8xf32>
    "tpu.trace_start"() <{level = 10 : i32, message = "bqk,bkd->bqd"}> : () -> ()
    %cst_32 = arith.constant dense<0.000000e+00> : vector<2x8x8xf32>
    %83 = tpu.matmul %82, %70, %cst_32 {dimension_numbers = #tpu.dot_dimension_numbers<[2], [1], [1], [2], [0, 0, 0, 1, 1, 2], [0], [0]>} : vector<2x8x8xf32>, vector<2x8x8xf32>, vector<2x8x8xf32> -> vector<2x8x8xf32>
    "tpu.trace_stop"() : () -> ()
    %84 = vector.shape_cast %83 : vector<2x8x8xf32> to vector<16x8xf32>
    %85 = vector.extract_strided_slice %40 {offsets = [0, 16], sizes = [16, 8], strides = [1, 1]} : vector<16x96xf32> to vector<16x8xf32>
    %cst_33 = arith.constant 0.353553385 : f32
    %86 = vector.broadcast %cst_33 : f32 to vector<16x8xf32>
    %87 = arith.mulf %85, %86 : vector<16x8xf32>
    %88 = vector.shape_cast %87 : vector<16x8xf32> to vector<2x8x8xf32>
    %89 = vector.extract_strided_slice %40 {offsets = [0, 48], sizes = [16, 8], strides = [1, 1]} : vector<16x96xf32> to vector<16x8xf32>
    %90 = vector.shape_cast %89 : vector<16x8xf32> to vector<2x8x8xf32>
    %91 = vector.extract_strided_slice %40 {offsets = [0, 80], sizes = [16, 8], strides = [1, 1]} : vector<16x96xf32> to vector<16x8xf32>
    %92 = vector.shape_cast %91 : vector<16x8xf32> to vector<2x8x8xf32>
    "tpu.trace_start"() <{level = 10 : i32, message = "bqd,bkd->bqk"}> : () -> ()
    %cst_34 = arith.constant dense<0.000000e+00> : vector<2x8x8xf32>
    %93 = tpu.matmul %88, %90, %cst_34 {dimension_numbers = #tpu.dot_dimension_numbers<[2], [2], [1], [1], [0, 0, 0, 1, 1, 1], [0], [0]>} : vector<2x8x8xf32>, vector<2x8x8xf32>, vector<2x8x8xf32> -> vector<2x8x8xf32>
    "tpu.trace_stop"() : () -> ()
    %94 = arith.addf %93, %7 : vector<2x8x8xf32>
    %cst_35 = arith.constant dense<0xFF800000> : vector<2x8xf32>
    %95 = vector.multi_reduction <maximumf>, %94, %cst_35 [2] : vector<2x8x8xf32> to vector<2x8xf32>
    %96 = vector.shape_cast %95 : vector<2x8xf32> to vector<2x8x1xf32>
    %97 = vector.broadcast %96 : vector<2x8x1xf32> to vector<2x8x8xf32>
    %98 = arith.subf %94, %97 : vector<2x8x8xf32>
    %99 = math.exp %98 : vector<2x8x8xf32>
    %cst_36 = arith.constant dense<0.000000e+00> : vector<2x8xf32>
    %100 = vector.multi_reduction <add>, %99, %cst_36 [2] : vector<2x8x8xf32> to vector<2x8xf32>
    %101 = vector.shape_cast %100 : vector<2x8xf32> to vector<2x8x1xf32>
    %102 = tpu.reciprocal %101 {approx = true} : vector<2x8x1xf32> -> vector<2x8x1xf32>
    %103 = vector.broadcast %102 : vector<2x8x1xf32> to vector<2x8x8xf32>
    %104 = arith.mulf %99, %103 : vector<2x8x8xf32>
    "tpu.trace_start"() <{level = 10 : i32, message = "bqk,bkd->bqd"}> : () -> ()
    %cst_37 = arith.constant dense<0.000000e+00> : vector<2x8x8xf32>
    %105 = tpu.matmul %104, %92, %cst_37 {dimension_numbers = #tpu.dot_dimension_numbers<[2], [1], [1], [2], [0, 0, 0, 1, 1, 2], [0], [0]>} : vector<2x8x8xf32>, vector<2x8x8xf32>, vector<2x8x8xf32> -> vector<2x8x8xf32>
    "tpu.trace_stop"() : () -> ()
    %106 = vector.shape_cast %105 : vector<2x8x8xf32> to vector<16x8xf32>
    %107 = vector.extract_strided_slice %40 {offsets = [0, 24], sizes = [16, 8], strides = [1, 1]} : vector<16x96xf32> to vector<16x8xf32>
    %cst_38 = arith.constant 0.353553385 : f32
    %108 = vector.broadcast %cst_38 : f32 to vector<16x8xf32>
    %109 = arith.mulf %107, %108 : vector<16x8xf32>
    %110 = vector.shape_cast %109 : vector<16x8xf32> to vector<2x8x8xf32>
    %111 = vector.extract_strided_slice %40 {offsets = [0, 56], sizes = [16, 8], strides = [1, 1]} : vector<16x96xf32> to vector<16x8xf32>
    %112 = vector.shape_cast %111 : vector<16x8xf32> to vector<2x8x8xf32>
    %113 = vector.extract_strided_slice %40 {offsets = [0, 88], sizes = [16, 8], strides = [1, 1]} : vector<16x96xf32> to vector<16x8xf32>
    %114 = vector.shape_cast %113 : vector<16x8xf32> to vector<2x8x8xf32>
    "tpu.trace_start"() <{level = 10 : i32, message = "bqd,bkd->bqk"}> : () -> ()
    %cst_39 = arith.constant dense<0.000000e+00> : vector<2x8x8xf32>
    %115 = tpu.matmul %110, %112, %cst_39 {dimension_numbers = #tpu.dot_dimension_numbers<[2], [2], [1], [1], [0, 0, 0, 1, 1, 1], [0], [0]>} : vector<2x8x8xf32>, vector<2x8x8xf32>, vector<2x8x8xf32> -> vector<2x8x8xf32>
    "tpu.trace_stop"() : () -> ()
    %116 = arith.addf %115, %7 : vector<2x8x8xf32>
    %cst_40 = arith.constant dense<0xFF800000> : vector<2x8xf32>
    %117 = vector.multi_reduction <maximumf>, %116, %cst_40 [2] : vector<2x8x8xf32> to vector<2x8xf32>
    %118 = vector.shape_cast %117 : vector<2x8xf32> to vector<2x8x1xf32>
    %119 = vector.broadcast %118 : vector<2x8x1xf32> to vector<2x8x8xf32>
    %120 = arith.subf %116, %119 : vector<2x8x8xf32>
    %121 = math.exp %120 : vector<2x8x8xf32>
    %cst_41 = arith.constant dense<0.000000e+00> : vector<2x8xf32>
    %122 = vector.multi_reduction <add>, %121, %cst_41 [2] : vector<2x8x8xf32> to vector<2x8xf32>
    %123 = vector.shape_cast %122 : vector<2x8xf32> to vector<2x8x1xf32>
    %124 = tpu.reciprocal %123 {approx = true} : vector<2x8x1xf32> -> vector<2x8x1xf32>
    %125 = vector.broadcast %124 : vector<2x8x1xf32> to vector<2x8x8xf32>
    %126 = arith.mulf %121, %125 : vector<2x8x8xf32>
    "tpu.trace_start"() <{level = 10 : i32, message = "bqk,bkd->bqd"}> : () -> ()
    %cst_42 = arith.constant dense<0.000000e+00> : vector<2x8x8xf32>
    %127 = tpu.matmul %126, %114, %cst_42 {dimension_numbers = #tpu.dot_dimension_numbers<[2], [1], [1], [2], [0, 0, 0, 1, 1, 2], [0], [0]>} : vector<2x8x8xf32>, vector<2x8x8xf32>, vector<2x8x8xf32> -> vector<2x8x8xf32>
    "tpu.trace_stop"() : () -> ()
    %128 = vector.shape_cast %127 : vector<2x8x8xf32> to vector<16x8xf32>
    %129 = tpu.concatenate %62, %84, %106, %128 in 1 : vector<16x8xf32>, vector<16x8xf32>, vector<16x8xf32>, vector<16x8xf32> -> vector<16x32xf32>
    %c0_43 = arith.constant 0 : index
    %c0_44 = arith.constant 0 : index
    %c0_45 = arith.constant 0 : index
    %130 = vector.load %arg8[%c0_43, %c0_44, %c0_45] : memref<1x32x32xf32, #tpu.memory_space<vmem>>, vector<1x32x32xf32>
    %131 = vector.shape_cast %130 : vector<1x32x32xf32> to vector<32x32xf32>
    %cst_46 = arith.constant dense<0.000000e+00> : vector<16x32xf32>
    %132 = tpu.matmul %129, %131, %cst_46 {dimension_numbers = #tpu.dot_dimension_numbers<[1], [0], [0], [1], [0, 0, 1, 1], [], []>} : vector<16x32xf32>, vector<32x32xf32>, vector<16x32xf32> -> vector<16x32xf32>
    %133 = arith.addf %4, %132 : vector<16x32xf32>
    %c0_47 = arith.constant 0 : index
    %c0_48 = arith.constant 0 : index
    %c0_49 = arith.constant 0 : index
    %134 = vector.load %arg9[%c0_47, %c0_48, %c0_49] : memref<1x1x32xf32, #tpu.memory_space<vmem>>, vector<1x1x32xf32>
    %135 = vector.shape_cast %134 : vector<1x1x32xf32> to vector<1x32xf32>
    %c0_50 = arith.constant 0 : index
    %c0_51 = arith.constant 0 : index
    %c0_52 = arith.constant 0 : index
    %136 = vector.load %arg10[%c0_50, %c0_51, %c0_52] : memref<1x1x32xf32, #tpu.memory_space<vmem>>, vector<1x1x32xf32>
    %137 = vector.shape_cast %136 : vector<1x1x32xf32> to vector<1x32xf32>
    %cst_53 = arith.constant dense<0.000000e+00> : vector<16xf32>
    %138 = vector.multi_reduction <add>, %133, %cst_53 [1] : vector<16x32xf32> to vector<16xf32>
    %139 = vector.shape_cast %138 : vector<16xf32> to vector<16x1xf32>
    %cst_54 = arith.constant 3.200000e+01 : f32
    %140 = vector.broadcast %cst_54 : f32 to vector<16x1xf32>
    %141 = arith.divf %139, %140 : vector<16x1xf32>
    %142 = vector.broadcast %141 : vector<16x1xf32> to vector<16x32xf32>
    %143 = arith.subf %133, %142 : vector<16x32xf32>
    %144 = arith.mulf %143, %143 : vector<16x32xf32>
    %cst_55 = arith.constant dense<0.000000e+00> : vector<16xf32>
    %145 = vector.multi_reduction <add>, %144, %cst_55 [1] : vector<16x32xf32> to vector<16xf32>
    %146 = vector.shape_cast %145 : vector<16xf32> to vector<16x1xf32>
    %cst_56 = arith.constant 3.200000e+01 : f32
    %147 = vector.broadcast %cst_56 : f32 to vector<16x1xf32>
    %148 = arith.divf %146, %147 : vector<16x1xf32>
    %149 = vector.broadcast %141 : vector<16x1xf32> to vector<16x32xf32>
    %150 = arith.subf %133, %149 : vector<16x32xf32>
    %cst_57 = arith.constant 9.99999974E-6 : f32
    %151 = vector.broadcast %cst_57 : f32 to vector<16x1xf32>
    %152 = arith.addf %148, %151 : vector<16x1xf32>
    %153 = math.rsqrt %152 : vector<16x1xf32>
    %154 = vector.broadcast %153 : vector<16x1xf32> to vector<16x32xf32>
    %155 = arith.mulf %150, %154 : vector<16x32xf32>
    %156 = vector.broadcast %135 : vector<1x32xf32> to vector<16x32xf32>
    %157 = arith.mulf %155, %156 : vector<16x32xf32>
    %158 = vector.broadcast %137 : vector<1x32xf32> to vector<16x32xf32>
    %159 = arith.addf %157, %158 : vector<16x32xf32>
    %c0_58 = arith.constant 0 : index
    %c0_59 = arith.constant 0 : index
    %c0_60 = arith.constant 0 : index
    %160 = vector.load %arg11[%c0_58, %c0_59, %c0_60] : memref<1x32x128xf32, #tpu.memory_space<vmem>>, vector<1x32x128xf32>
    %161 = vector.shape_cast %160 : vector<1x32x128xf32> to vector<32x128xf32>
    %cst_61 = arith.constant dense<0.000000e+00> : vector<16x128xf32>
    %162 = tpu.matmul %159, %161, %cst_61 {dimension_numbers = #tpu.dot_dimension_numbers<[1], [0], [0], [1], [0, 0, 1, 1], [], []>} : vector<16x32xf32>, vector<32x128xf32>, vector<16x128xf32> -> vector<16x128xf32>
    %c0_62 = arith.constant 0 : index
    %c0_63 = arith.constant 0 : index
    %c0_64 = arith.constant 0 : index
    %163 = vector.load %arg12[%c0_62, %c0_63, %c0_64] : memref<1x1x128xf32, #tpu.memory_space<vmem>>, vector<1x1x128xf32>
    %164 = vector.shape_cast %163 : vector<1x1x128xf32> to vector<1x128xf32>
    %165 = vector.broadcast %164 : vector<1x128xf32> to vector<16x128xf32>
    %166 = arith.addf %162, %165 : vector<16x128xf32>
    %cst_65 = arith.constant 0.000000e+00 : f32
    %167 = vector.broadcast %cst_65 : f32 to vector<16x128xf32>
    %168 = arith.maximumf %166, %167 : vector<16x128xf32>
    %c0_66 = arith.constant 0 : index
    %c0_67 = arith.constant 0 : index
    %c0_68 = arith.constant 0 : index
    %169 = vector.load %arg13[%c0_66, %c0_67, %c0_68] : memref<1x128x32xf32, #tpu.memory_space<vmem>>, vector<1x128x32xf32>
    %170 = vector.shape_cast %169 : vector<1x128x32xf32> to vector<128x32xf32>
    %cst_69 = arith.constant dense<0.000000e+00> : vector<16x32xf32>
    %171 = tpu.matmul %168, %170, %cst_69 {dimension_numbers = #tpu.dot_dimension_numbers<[1], [0], [0], [1], [0, 0, 1, 1], [], []>} : vector<16x128xf32>, vector<128x32xf32>, vector<16x32xf32> -> vector<16x32xf32>
    %c0_70 = arith.constant 0 : index
    %c0_71 = arith.constant 0 : index
    %c0_72 = arith.constant 0 : index
    %172 = vector.load %arg14[%c0_70, %c0_71, %c0_72] : memref<1x1x32xf32, #tpu.memory_space<vmem>>, vector<1x1x32xf32>
    %173 = vector.shape_cast %172 : vector<1x1x32xf32> to vector<1x32xf32>
    %174 = vector.broadcast %173 : vector<1x32xf32> to vector<16x32xf32>
    %175 = arith.addf %171, %174 : vector<16x32xf32>
    %176 = arith.addf %133, %175 : vector<16x32xf32>
    %177 = vector.shape_cast %176 : vector<16x32xf32> to vector<2x8x32xf32>
    %c0_73 = arith.constant 0 : index
    %c0_74 = arith.constant 0 : index
    %c0_75 = arith.constant 0 : index
    %178 = vector.load %arg15[%c0_73, %c0_74, %c0_75] : memref<2x8x32xf32, #tpu.memory_space<vmem>>, vector<2x8x32xf32>
    tpu.vector_store %arg15[%c0_73, %c0_74, %c0_75], %177 {strides = array<i32>} : memref<2x8x32xf32, #tpu.memory_space<vmem>>, vector<2x8x32xf32>,
    return
  }
  func.func @transform_0(%arg0: i32, %arg1: i32) -> (i32, i32, i32) {
    %c0_i32 = arith.constant 0 : i32
    %c0_i32_0 = arith.constant 0 : i32
    %c0_i32_1 = arith.constant 0 : i32
    return %arg0, %c0_i32, %c0_i32_0 : i32, i32, i32
  }
  func.func @transform_1(%arg0: i32, %arg1: i32) -> (i32, i32, i32) {
    %c0_i32 = arith.constant 0 : i32
    %c0_i32_0 = arith.constant 0 : i32
    %c0_i32_1 = arith.constant 0 : i32
    return %arg0, %c0_i32, %c0_i32_0 : i32, i32, i32
  }
  func.func @transform_2(%arg0: i32, %arg1: i32) -> (i32, i32, i32) {
    %c0_i32 = arith.constant 0 : i32
    %c0_i32_0 = arith.constant 0 : i32
    %c0_i32_1 = arith.constant 0 : i32
    return %arg1, %c0_i32, %c0_i32_0 : i32, i32, i32
  }
  func.func @transform_3(%arg0: i32, %arg1: i32) -> (i32, i32, i32) {
    %c0_i32 = arith.constant 0 : i32
    %c0_i32_0 = arith.constant 0 : i32
    %c0_i32_1 = arith.constant 0 : i32
    return %arg1, %c0_i32, %c0_i32_0 : i32, i32, i32
  }
  func.func @transform_4(%arg0: i32, %arg1: i32) -> (i32, i32, i32) {
    %c0_i32 = arith.constant 0 : i32
    %c0_i32_0 = arith.constant 0 : i32
    %c0_i32_1 = arith.constant 0 : i32
    return %arg1, %c0_i32, %c0_i32_0 : i32, i32, i32
  }
  func.func @transform_5(%arg0: i32, %arg1: i32) -> (i32, i32, i32) {
    %c0_i32 = arith.constant 0 : i32
    %c0_i32_0 = arith.constant 0 : i32
    %c0_i32_1 = arith.constant 0 : i32
    return %arg1, %c0_i32, %c0_i32_0 : i32, i32, i32
  }
  func.func @transform_6(%arg0: i32, %arg1: i32) -> (i32, i32, i32) {
    %c0_i32 = arith.constant 0 : i32
    %c0_i32_0 = arith.constant 0 : i32
    %c0_i32_1 = arith.constant 0 : i32
    return %arg1, %c0_i32, %c0_i32_0 : i32, i32, i32
  }
  func.func @transform_7(%arg0: i32, %arg1: i32) -> (i32, i32, i32) {
    %c0_i32 = arith.constant 0 : i32
    %c0_i32_0 = arith.constant 0 : i32
    %c0_i32_1 = arith.constant 0 : i32
    return %arg1, %c0_i32, %c0_i32_0 : i32, i32, i32
  }
  func.func @transform_8(%arg0: i32, %arg1: i32) -> (i32, i32, i32) {
    %c0_i32 = arith.constant 0 : i32
    %c0_i32_0 = arith.constant 0 : i32
    %c0_i32_1 = arith.constant 0 : i32
    return %arg1, %c0_i32, %c0_i32_0 : i32, i32, i32
  }
  func.func @transform_9(%arg0: i32, %arg1: i32) -> (i32, i32, i32) {
    %c0_i32 = arith.constant 0 : i32
    %c0_i32_0 = arith.constant 0 : i32
    %c0_i32_1 = arith.constant 0 : i32
    return %arg1, %c0_i32, %c0_i32_0 : i32, i32, i32
  }
  func.func @transform_10(%arg0: i32, %arg1: i32) -> (i32, i32, i32) {
    %c0_i32 = arith.constant 0 : i32
    %c0_i32_0 = arith.constant 0 : i32
    %c0_i32_1 = arith.constant 0 : i32
    return %arg1, %c0_i32, %c0_i32_0 : i32, i32, i32
  }
  func.func @transform_11(%arg0: i32, %arg1: i32) -> (i32, i32, i32) {
    %c0_i32 = arith.constant 0 : i32
    %c0_i32_0 = arith.constant 0 : i32
    %c0_i32_1 = arith.constant 0 : i32
    return %arg1, %c0_i32, %c0_i32_0 : i32, i32, i32
  }
  func.func @transform_12(%arg0: i32, %arg1: i32) -> (i32, i32, i32) {
    %c0_i32 = arith.constant 0 : i32
    %c0_i32_0 = arith.constant 0 : i32
    %c0_i32_1 = arith.constant 0 : i32
    return %arg1, %c0_i32, %c0_i32_0 : i32, i32, i32
  }
  func.func @transform_13(%arg0: i32, %arg1: i32) -> (i32, i32, i32) {
    %c0_i32 = arith.constant 0 : i32
    %c0_i32_0 = arith.constant 0 : i32
    %c0_i32_1 = arith.constant 0 : i32
    return %arg0, %c0_i32, %c0_i32_0 : i32, i32, i32
  }
}

</mosaic_0001>

<bundles_post_ra>
// kernel: tpu_custom_call.1
= control target key start
LH: loop header
LB: loop body
LE: loop exit
PB: predicated region body
PF: predicated region fallthrough
CT: control target
= control target key end

     0   :  { %s2296_s0 = inlined_call_operand.vmem [shape: f32[2,8,32], index: 0, kind: input, shape index: {}]   ;;  %s2297_s1 = inlined_call_operand.vmem [shape: f32[2,1,8], index: 1, kind: input, shape index: {}]   ;;  %s2298_s2 = inlined_call_operand.vmem [shape: f32[2,1,32], index: 2, kind: input, shape index: {}]   ;;  %s2299_s3 = inlined_call_operand.vmem [shape: f32[2,1,32], index: 3, kind: input, shape index: {}]   ;;  %s2300_s4 = inlined_call_operand.vmem [shape: f32[2,32,96], index: 4, kind: input, shape index: {}]   ;;  %s2301_s5 = inlined_call_operand.vmem [shape: f32[2,1,96], index: 5, kind: input, shape index: {}]   ;;  %s2302_s6 = inlined_call_operand.vmem [shape: f32[2,32,32], index: 6, kind: input, shape index: {}]   ;;  %s2303_s7 = inlined_call_operand.vmem [shape: f32[2,1,32], index: 7, kind: input, shape index: {}]   ;;  %s2304_s8 = inlined_call_operand.vmem [shape: f32[2,1,32], index: 8, kind: input, shape index: {}]   ;;  %s2305_s9 = inlined_call_operand.vmem [shape: f32[2,32,128], index: 9, kind: input, shape index: {}]   ;;  %s2306_s10 = inlined_call_operand.vmem [shape: f32[2,1,128], index: 10, kind: input, shape index: {}]   ;;  %s2307_s11 = inlined_call_operand.vmem [shape: f32[2,128,32], index: 11, kind: input, shape index: {}]   ;;  %s2308_s12 = inlined_call_operand.vmem [shape: f32[2,1,32], index: 12, kind: input, shape index: {}]   ;;  %s2309_s13 = inlined_call_operand.hbm [shape: f32[2,8,32], index: 13, kind: output, shape index: {}]  }
   0x1   :  { %2313 = sst [smem:[#allocation9_spill]] %s2300_s4 }
   0x2   :  { %2314 = sst [smem:[#allocation10_spill]] %s2302_s6 }
   0x3   :  { %2315 = sst [smem:[#allocation11_spill]] %s2309_s13 }
   0x4   :  { %18 = vsyncpa [#allocation3], 0  ;;  %s1980_s25 = smov 0   ;;  %s1982_s26 = smov 0  }
   0x5   :  { %s1984_s27 = smov 0  }
   0x6 LB: > { %2316 = sst [smem:[#allocation5_spill]] %s1887_s26  ;;  %s33_s29 = sadd.s32 1, %s1887_s26  ;;  %s1891_s27 = sphi %s1984_s27, %s24_s27   ;;  %s1887_s26 = sphi %s1982_s26, %s2332_s26   ;;  %s1883_s25 = sphi %s1980_s25, %s2331_s25  }
   0x7   : > { %2317 = sst [smem:[#allocation6_spill]] %s1891_s27  ;;  %p34_p0 = scmp.ge.s32.totalorder %s33_s29, 2 }
   0x8   : > { %p1691_p1 = scmp.ge.s32.totalorder %s1891_s27, 1  ;;  %p507_p2 = scmp.lt.s32.totalorder %s1891_s27, 3 }
   0x9   : > { %s2334_s29 = smov (%p34_p0, %s33_s29), 0 }
   0xa   : > { %2318 = sst [smem:[#allocation7_spill]] %s2334_s29  ;;  %p508_p3 = pnand %p1691_p1, %p507_p2 }
   0xc   : > { %511 = sbr.rel (%p508_p3) target bundleno = 2695 (0xa87), region = 72 }
  0x11   : > { %p602_p4 = scmp.lt.s32.totalorder %s1883_s25, 1  ;;  %s2319_s4 = sld [smem:[#allocation9_spill]] }
  0x12   : > { %s2320_s6 = sld [smem:[#allocation10_spill]]  ;;  %p1700_p5 = scmp.ne.s32.totalorder %s1883_s25, 0 }
  0x13   : > { %s1999_s30 = scalar_select %p602_p4, %s1883_s25, 1 }
  0x15   : > { %s1735_s20 = sshll.u32 %s1999_s30, 5  ;;  %s626_s27 = scalar_lea.vmem %s2304_s8, %s1999_s30 }
  0x16   : > { %s2035_s23 = scalar_lea.vmem %s2305_s9, %s1735_s20  ;;  %s1738_s28 = sshll.u32 %s1999_s30, 7 }
  0x17   : > { %s2017_s15 = scalar_lea.vmem %s2319_s4, %s1735_s20  ;;  %s634_s4 = scalar_lea.vmem %s2306_s10, %s1999_s30 }
  0x18   : > { %s2022_s26 = scalar_lea.vmem %s2320_s6, %s1735_s20  ;;  %s2049_s17 = scalar_lea.vmem %s2307_s11, %s1738_s28 }
  0x19   : > { %2321 = sst [smem:[#allocation8_spill]] %s2022_s26  ;;  %s642_s26 = scalar_lea.vmem %s2308_s12, %s1999_s30 }
  0x1a   : > { %647 = sbr.rel (%p1700_p5) target bundleno = 34 (0x22), region = 76 }
  0x1f   : > { %v648_v0 = vld [vmem:[%s2296_s0] sm:$0xff]  ;;  %vm650_vm0 = vcmask 261120   ;;  %v649_v1 = vld [vmem:[%s2296_s0 + $0x8] sm:$0xff] }
  0x20   : > { %651 = vst.msk [vmem:[#allocation2] sm:$0xff] %vm650_vm0, %v648_v0 }
  0x21   : > { %652 = vst.msk [vmem:[#allocation2 + $0x8] sm:$0xff] %vm650_vm0, %v649_v1 }
  0x22 PF: > { %vm665_vm1 = vcmask 261120   ;;  %v1893_v6 = vmov 32.0   ;;  %v730_v23 = vld [vmem:[%s2017_s15 + $0x18] sm:$0xff]  ;;  %v729_v24 = vld [vmem:[%s2017_s15 + $0x10] sm:$0xff]  ;;  %v728_v25 = vld [vmem:[%s2017_s15 + $0x8] sm:$0xff]  ;;  %s2323_s14 = scalar_lea.vmem %s2299_s3, %s1999_s30  ;;  %s2324_s13 = scalar_lea.vmem %s2301_s5, %s1999_s30  ;;  %vm769_vm9 = vcmask 64512  }
  0x23   : > { %1795 = vrcp.f32 %v1893_v6  ;;  %753 = vmatpush.msra.mxu0 %v730_v23  ;;  %v727_v26 = vld [vmem:[%s2017_s15] sm:$0xff]  ;;  %s2322_s15 = scalar_lea.vmem %s2298_s2, %s1999_s30  ;;  %s1894_s16 = smov 96   ;;  %vm1313_vm10 = vcmask 130048   ;;  %vm1316_vm11 = vcmask 195584  }
  0x24   : > { %v1786_v41 = vld [vmem:[%s2322_s15] ss:$0 sm:$0xff]  ;;  %v2124_v6 = vld [vmem:[%s2297_s1 + $0x1] ss:$0 sm:$0xff]  ;;  %s1895_s6 = smov 64   ;;  %s1896_s25 = smov 88  }
  0x25   : > { %754 = vmatpush.msra.mxu0 %v729_v24  ;;  %v1787_v45 = vld [vmem:[%s2323_s14] ss:$0 sm:$0xff]  ;;  %s1897_s15 = smov 120   ;;  %s1898_s22 = smov 56  }
  0x26   : > { %v1788_v55 = vld [vmem:[%s2324_s13] ss:$0 sm:$0xff]  ;;  %s1899_s24 = smov 80   ;;  %s1900_s14 = smov 104  }
  0x27   : > { %v2057_v2 = vld [vmem:[#allocation2] sm:$0xff]  ;;  %755 = vmatpush.msra.mxu0 %v728_v25  ;;  %s1901_s28 = smov 112   ;;  %s1902_s29 = smov 72  }
  0x28   : > { %v666_v3 = vsel %vm665_vm1, %v2057_v2, 0.0  ;;  %v2061_v4 = vld [vmem:[#allocation2 + $0x8] sm:$0xff]  ;;  %v2117_v0 = vld [vmem:[%s2297_s1] ss:$0 sm:$0xff]  ;;  %s1903_s13 = smov 48   ;;  %s1905_s19 = smov 8  }
  0x29   : > { %667 = vadd.xlane.f32.xlu0 %v666_v3  ;;  %v669_v5 = vsel %vm665_vm1, %v2061_v4, 0.0  ;;  %v1796_v7 = vpop.eup %1795  ;;  %756 = vmatpush.msra.mxu0 %v727_v26  ;;  %s2325_s18 = sld [smem:[#allocation8_spill]]  ;;  %s1906_s20 = smov 16  }
  0x2a   : > { %v673_v8 = vmul.f32 32.0, %v1796_v7  ;;  %vm677_vm2 = vweird.f32 %v1796_v7  ;;  %s1907_s21 = smov 24  }
  0x2c   : > { %v674_v9 = vsub.f32 1.0, %v673_v8 }
  0x2e   : > { %v675_v10 = vmul.f32 %v1796_v7, %v674_v9 }
  0x30   : > { %v676_v11 = vadd.f32 %v1796_v7, %v675_v10 }
  0x31   : > { %670 = vadd.xlane.f32.xlu0 %v669_v5 }
  0x32   : > { %v2065_v12 = vsel %vm677_vm2, %v1796_v7, %v676_v11 }
  0x9c   : > { %v668_v13 = vpop.xlane.xlu0 %667 }
  0x9d   : > { %v679_v14 = vmul.f32 %v2065_v12, %v668_v13 }
  0x9f   : > { %v681_v15 = vsub.f32 %v2057_v2, %v679_v14 }
  0xa1   : > { %v683_v16 = vmul.f32 %v681_v15, %v681_v15 }
  0xa3   : > { %v685_v17 = vsel %vm665_vm1, %v683_v16, 0.0 }
  0xa4   : > { %686 = vadd.xlane.f32.xlu1 %v685_v17  ;;  %v671_v18 = vpop.xlane.xlu0 %670 }
  0xa5   : > { %v680_v19 = vmul.f32 %v2065_v12, %v671_v18 }
  0xa7   : > { %v682_v20 = vsub.f32 %v2061_v4, %v680_v19 }
  0xa9   : > { %v684_v21 = vmul.f32 %v682_v20, %v682_v20 }
  0xab   : > { %v688_v22 = vsel %vm665_vm1, %v684_v21, 0.0 }
  0xac   : > { %689 = vadd.xlane.f32.xlu1 %v688_v22 }
 0x117   : > { %v687_v27 = vpop.xlane.xlu1 %686 }
 0x118   : > { %v691_v28 = vmul.f32 %v687_v27, %v2065_v12 }
 0x11a   : > { %v693_v29 = vadd.f32 1e-05, %v691_v28 }
 0x11c   : > { %1797 = vrsqrt.f32 %v693_v29  ;;  %vm701_vm4 = vweird.f32 %v693_v29 }
 0x11f   : > { %v690_v30 = vpop.xlane.xlu1 %689 }
 0x120   : > { %v692_v31 = vmul.f32 %v690_v30, %v2065_v12 }
 0x122   : > { %v1798_v32 = vpop.eup %1797  ;;  %v694_v33 = vadd.f32 1e-05, %v692_v31 }
 0x123   : > { %v696_v34 = vmul.f32 %v1798_v32, %v693_v29  ;;  %vm702_vm3 = vweird.f32 %v1798_v32 }
 0x124   : > { %1799 = vrsqrt.f32 %v694_v33  ;;  %vm703_vm5 = vmor %vm701_vm4, %vm702_vm3  ;;  %vm711_vm7 = vweird.f32 %v694_v33 }
 0x125   : > { %v697_v35 = vmul.f32 %v1798_v32, %v696_v34 }
 0x127   : > { %v698_v36 = vmul.f32 0.5, %v697_v35 }
 0x129   : > { %v699_v37 = vsub.f32 1.5, %v698_v36 }
 0x12a   : > { %v1800_v38 = vpop.eup %1799 }
 0x12b   : > { %v700_v39 = vmul.f32 %v1798_v32, %v699_v37  ;;  %v706_v40 = vmul.f32 %v1800_v38, %v694_v33  ;;  %vm712_vm6 = vweird.f32 %v1800_v38 }
 0x12c   : > { %vm713_vm8 = vmor %vm711_vm7, %vm712_vm6 }
 0x12d   : > { %v704_v42 = vsel %vm703_vm5, %v1798_v32, %v700_v39  ;;  %v707_v43 = vmul.f32 %v1800_v38, %v706_v40 }
 0x12e   : > { %v715_v44 = vmul.f32 %v704_v42, %v681_v15 }
 0x12f   : > { %v708_v46 = vmul.f32 0.5, %v707_v43 }
 0x130   : > { %v720_v47 = vmul.f32 %v1786_v41, %v715_v44 }
 0x131   : > { %v709_v48 = vsub.f32 1.5, %v708_v46 }
 0x132   : > { %v725_v49 = vadd.f32 %v1787_v45, %v720_v47 }
 0x133   : > { %v710_v50 = vmul.f32 %v1800_v38, %v709_v48 }
 0x134   : > { %1701 = vmatmul.msk.f32.vlgmr.msra.gmra.mxu0 %vm665_vm1, %v725_v49 }
 0x135   : > { %v714_v51 = vsel %vm713_vm8, %v1800_v38, %v710_v50 }
 0x136   : > { %v716_v52 = vmul.f32 %v714_v51, %v682_v20 }
 0x138   : > { %v721_v53 = vmul.f32 %v1786_v41, %v716_v52 }
 0x13a   : > { %v726_v54 = vadd.f32 %v1787_v45, %v721_v53 }
 0x13c   : > { %1702 = vmatmul.msk.f32.gmra.mxu0 %vm665_vm1, %v726_v54 }
 0x1b1   : > { %v758_v56 = vpop.f32.mrf.mxu0 }
 0x1b2   : > { %v2096_v57 = vadd.f32 %v1788_v55, %v758_v56 }
 0x1b4   : > { %767 = vrot.lane.b32.xlu2 %v2096_v57, %s1894_s16  ;;  %v2104_v61 = vmul.f32 0.35355338, %v2096_v57 }
 0x1b9   : > { %v761_v58 = vpop.f32.mrf.mxu0 }
 0x1ba   : > { %v2099_v59 = vadd.f32 %v1788_v55, %v761_v58 }
 0x1bc   : > { %796 = vrot.lane.b32.xlu2 %v2099_v59, %s1894_s16  ;;  %v2110_v63 = vmul.f32 0.35355338, %v2099_v59  ;;  %s1904_s16 = smov 40  }
 0x20e   : > { %v768_v60 = vpop.permute.xlu2 %767 }
 0x20f   : > { %1703 = vmatpush.xpose.msk.msra.mxu1 %vm769_vm9, %v768_v60 }
 0x212   : > { %1704 = vmatmul.msk.f32.vlgmr.msra.gmra.mxu1 %vm769_vm9, %v2104_v61 }
 0x216   : > { %v797_v62 = vpop.permute.xlu2 %796 }
 0x217   : > { %1705 = vmatpush.xpose.msk.msra.mxu2 %vm769_vm9, %v797_v62 }
 0x21a   : > { %1706 = vmatmul.msk.f32.vlgmr.msra.gmra.mxu2 %vm769_vm9, %v2110_v63 }
 0x28f   : > { %v792_v1 = vpop.f32.mrf.mxu1 }
 0x290   : > { %v793_v3 = vadd.f32 %v2117_v0, %v792_v1 }
 0x292   : > { %v823_v5 = vsel %vm769_vm9, %v793_v3, -inf }
 0x293   : > { %824 = vmax.xlane.f32.xlu0 %v823_v5 }
 0x29d   : > { %v820_v7 = vpop.f32.mrf.mxu2 }
 0x29e   : > { %v821_v8 = vadd.f32 %v2124_v6, %v820_v7 }
 0x2a0   : > { %v826_v9 = vsel %vm769_vm9, %v821_v8, -inf }
 0x2a1   : > { %827 = vmax.xlane.f32.xlu1 %v826_v9 }
 0x2a7   : > { %871 = vrot.lane.b32.xlu0 %v2099_v59, %s1895_s6 }
 0x2ba   : > { %845 = vrot.lane.b32.xlu1 %v2096_v57, %s1895_s6 }
 0x2c2   : > { %899 = vrot.lane.b32.xlu1 %v2096_v57, %s1896_s25 }
 0x306   : > { %v825_v10 = vpop.xlane.xlu0 %824 }
 0x307   : > { %v829_v11 = vsub.f32 %v793_v3, %v825_v10 }
 0x309   : > { %v831_v13 = vmul.f32 1.442695, %v829_v11 }
 0x30b   : > { %1801 = vpow2.f32 %v831_v13 }
 0x311   : > { %v1802_v14 = vpop.eup %1801 }
 0x312   : > { %v835_v15 = vsel %vm769_vm9, %v1802_v14, 0.0 }
 0x313   : > { %836 = vadd.xlane.f32.xlu2 %v835_v15 }
 0x314   : > { %v828_v16 = vpop.xlane.xlu1 %827 }
 0x315   : > { %v830_v17 = vsub.f32 %v821_v8, %v828_v16 }
 0x317   : > { %v833_v18 = vmul.f32 1.442695, %v830_v17 }
 0x319   : > { %1803 = vpow2.f32 %v833_v18  ;;  %v872_v22 = vpop.permute.xlu0 %871 }
 0x31f   : > { %v1804_v19 = vpop.eup %1803 }
 0x320   : > { %v838_v20 = vsel %vm769_vm9, %v1804_v19, 0.0 }
 0x321   : > { %839 = vadd.xlane.f32.xlu0 %v838_v20 }
 0x32b   : > { %927 = vrot.lane.b32.xlu2 %v2099_v59, %s1896_s25  ;;  %s2326_s25 = scalar_lea.vmem %s2303_s7, %s1999_s30 }
 0x32c   : > { %v846_v21 = vpop.permute.xlu1 %845 }
 0x32d   : > { %866 = vmatpush.msrb.mxu1 %v846_v21 }
 0x32f   : > { %892 = vmatpush.msra.mxu1 %v872_v22 }
 0x333   : > { %925 = vrot.lane.b32.xlu2 %v2110_v63, %s1897_s15 }
 0x334   : > { %v900_v27 = vpop.permute.xlu1 %899 }
 0x335   : > { %897 = vrot.lane.b32.xlu0 %v2104_v61, %s1897_s15 }
 0x33b   : > { %975 = vrot.lane.b32.xlu2 %v2096_v57, %s1898_s22 }
 0x343   : > { %1029 = vrot.lane.b32.xlu2 %v2096_v57, %s1899_s24 }
 0x34b   : > { %1157 = vrot.lane.b32.xlu2 %v2104_v61, %s1900_s14 }
 0x353   : > { %1057 = vrot.lane.b32.xlu2 %v2099_v59, %s1899_s24 }
 0x35b   : > { %1055 = vrot.lane.b32.xlu2 %v2110_v63, %s1901_s28 }
 0x386   : > { %v837_v23 = vpop.xlane.xlu2 %836 }
 0x387   : > { %1805 = vrcp.f32 %v837_v23 }
 0x38d   : > { %v1806_v24 = vpop.eup %1805 }
 0x38e   : > { %v928_v25 = vpop.permute.xlu2 %927  ;;  %v843_v26 = vmul.f32 %v1806_v24, %v1802_v14 }
 0x38f   : > { %1711 = vmatpush.xpose.msk.msrb.mxu2 %vm769_vm9, %v928_v25 }
 0x390   : > { %1707 = vmatmul.msk.f32.vlgmr.msrb.gmra.mxu1 %vm769_vm9, %v843_v26 }
 0x391   : > { %1709 = vmatpush.xpose.msk.msrb.mxu1 %vm769_vm9, %v900_v27 }
 0x394   : > { %v840_v28 = vpop.xlane.xlu0 %839 }
 0x395   : > { %1807 = vrcp.f32 %v840_v28 }
 0x396   : > { %v926_v29 = vpop.permute.xlu2 %925 }
 0x397   : > { %1712 = vmatmul.msk.f32.vlgmr.msrb.gmra.mxu2 %vm769_vm9, %v926_v29 }
 0x39b   : > { %v1808_v30 = vpop.eup %1807 }
 0x39c   : > { %v844_v31 = vmul.f32 %v1808_v30, %v1804_v19 }
 0x39e   : > { %v976_v32 = vpop.permute.xlu2 %975  ;;  %1708 = vmatmul.msk.f32.vlgmr.msra.gmra.mxu1 %vm769_vm9, %v844_v31 }
 0x39f   : > { %996 = vmatpush.msra.mxu2 %v976_v32 }
 0x3a6   : > { %v1030_v33 = vpop.permute.xlu2 %1029 }
 0x3a7   : > { %1715 = vmatpush.xpose.msk.msrb.mxu2 %vm769_vm9, %v1030_v33  ;;  %v898_v34 = vpop.permute.xlu0 %897 }
 0x3a8   : > { %1710 = vmatmul.msk.f32.vlgmr.msrb.gmra.mxu1 %vm769_vm9, %v898_v34 }
 0x3ae   : > { %v1158_v35 = vpop.permute.xlu2 %1157 }
 0x3b6   : > { %v1058_v36 = vpop.permute.xlu2 %1057 }
 0x3b7   : > { %1717 = vmatpush.xpose.msk.msrb.mxu0 %vm769_vm9, %v1058_v36 }
 0x3be   : > { %v1056_v37 = vpop.permute.xlu2 %1055 }
 0x3bf   : > { %1718 = vmatmul.msk.f32.vlgmr.msrb.gmra.mxu0 %vm769_vm9, %v1056_v37 }
 0x40d   : > { %v2153_v38 = vpop.f32.mrf.mxu1 }
 0x41a   : > { %v950_v48 = vpop.f32.mrf.mxu2 }
 0x41b   : > { %v2155_v39 = vpop.f32.mrf.mxu1  ;;  %v951_v49 = vadd.f32 %v2124_v6, %v950_v48 }
 0x41d   : > { %v956_v50 = vsel %vm769_vm9, %v951_v49, -inf }
 0x425   : > { %v922_v40 = vpop.f32.mrf.mxu1 }
 0x426   : > { %v923_v41 = vadd.f32 %v2117_v0, %v922_v40 }
 0x428   : > { %v953_v42 = vsel %vm769_vm9, %v923_v41, -inf }
 0x429   : > { %954 = vmax.xlane.f32.xlu1 %v953_v42 }
 0x442   : > { %1027 = vrot.lane.b32.xlu1 %v2104_v61, %s1901_s28  ;;  %v1080_v61 = vpop.f32.mrf.mxu0 }
 0x443   : > { %v1081_v8 = vadd.f32 %v2124_v6, %v1080_v61 }
 0x445   : > { %v1086_v16 = vsel %vm769_vm9, %v1081_v8, -inf }
 0x44a   : > { %1185 = vrot.lane.b32.xlu1 %v2110_v63, %s1900_s14  ;;  %s2327_s14 = sld [smem:[#allocation6_spill]] }
 0x49c   : > { %v955_v43 = vpop.xlane.xlu1 %954 }
 0x49d   : > { %v959_v44 = vsub.f32 %v923_v41, %v955_v43 }
 0x49f   : > { %v961_v45 = vmul.f32 1.442695, %v959_v44 }
 0x4a1   : > { %1809 = vpow2.f32 %v961_v45 }
 0x4a7   : > { %v1810_v46 = vpop.eup %1809 }
 0x4a8   : > { %v965_v47 = vsel %vm769_vm9, %v1810_v46, 0.0 }
 0x4a9   : > { %966 = vadd.xlane.f32.xlu0 %v965_v47 }
 0x4b4   : > { %v1028_v54 = vpop.permute.xlu1 %1027 }
 0x4bc   : > { %v1186_v58 = vpop.permute.xlu1 %1185 }
 0x4bd   : > { %1159 = vrot.lane.b32.xlu0 %v2096_v57, %s1902_s29 }
 0x4c5   : > { %1187 = vrot.lane.b32.xlu0 %v2099_v59, %s1902_s29 }
 0x4ef   : > { %957 = vmax.xlane.f32.xlu0 %v956_v50 }
 0x51c   : > { %v967_v51 = vpop.xlane.xlu0 %966 }
 0x51d   : > { %1811 = vrcp.f32 %v967_v51 }
 0x523   : > { %v1812_v52 = vpop.eup %1811 }
 0x524   : > { %v973_v53 = vmul.f32 %v1812_v52, %v1810_v46 }
 0x526   : > { %1713 = vmatmul.msk.f32.vlgmr.msra.gmra.mxu2 %vm769_vm9, %v973_v53 }
 0x52e   : > { %1716 = vmatmul.msk.f32.vlgmr.msrb.gmra.mxu2 %vm769_vm9, %v1028_v54 }
 0x52f   : > { %v1160_v55 = vpop.permute.xlu0 %1159 }
 0x530   : > { %1721 = vmatpush.xpose.msk.msra.mxu2 %vm769_vm9, %v1160_v55 }
 0x536   : > { %1722 = vmatmul.msk.f32.vlgmr.msra.gmra.mxu2 %vm769_vm9, %v1158_v35 }
 0x537   : > { %v1188_v56 = vpop.permute.xlu0 %1187 }
 0x538   : > { %1723 = vmatpush.xpose.msk.msra.mxu0 %vm769_vm9, %v1188_v56 }
 0x53b   : > { %1724 = vmatmul.msk.f32.vlgmr.msra.gmra.mxu0 %vm769_vm9, %v1186_v58 }
 0x562   : > { %v958_v62 = vpop.xlane.xlu0 %957 }
 0x563   : > { %v960_v3 = vsub.f32 %v951_v49, %v958_v62 }
 0x565   : > { %v963_v7 = vmul.f32 1.442695, %v960_v3  ;;  %v1321_v3 = vld [vmem:[%s2325_s18 + $0x10] sm:$0xff] }
 0x567   : > { %1813 = vpow2.f32 %v963_v7  ;;  %v1319_v7 = vld [vmem:[%s2325_s18] sm:$0xff] }
 0x56d   : > { %v1814_v17 = vpop.eup %1813 }
 0x56e   : > { %v968_v18 = vsel %vm769_vm9, %v1814_v17, 0.0 }
 0x5a9   : > { %v998_v60 = vpop.f32.mrf.mxu2 }
 0x5b1   : > { %v1052_v63 = vpop.f32.mrf.mxu2 }
 0x5b2   : > { %v1053_v1 = vadd.f32 %v2117_v0, %v1052_v63 }
 0x5b4   : > { %v1083_v5 = vsel %vm769_vm9, %v1053_v1, -inf }
 0x5b5   : > { %1084 = vmax.xlane.f32.xlu2 %v1083_v5  ;;  %v1320_v5 = vld [vmem:[%s2325_s18 + $0x8] sm:$0xff] }
 0x5b8   : > { %v1210_v9 = vpop.f32.mrf.mxu0 }
 0x5b9   : > { %v1211_v10 = vadd.f32 %v2124_v6, %v1210_v9  ;;  %v1182_v11 = vpop.f32.mrf.mxu2 }
 0x5ba   : > { %v1183_v13 = vadd.f32 %v2117_v0, %v1182_v11 }
 0x5bb   : > { %v1216_v14 = vsel %vm769_vm9, %v1211_v10, -inf }
 0x5bc   : > { %1217 = vmax.xlane.f32.xlu0 %v1216_v14  ;;  %v1213_v15 = vsel %vm769_vm9, %v1183_v13, -inf }
 0x5bd   : > { %1214 = vmax.xlane.f32.xlu1 %v1213_v15  ;;  %1087 = vmax.xlane.f32.xlu2 %v1086_v16 }
 0x5c5   : > { %969 = vadd.xlane.f32.xlu2 %v968_v18 }
 0x5d0   : > { %1001 = vrot.lane.b32.xlu0 %v2099_v59, %s1898_s22 }
 0x5d8   : > { %1131 = vrot.lane.b32.xlu0 %v2099_v59, %s1903_s13 }
 0x628   : > { %v1085_v0 = vpop.xlane.xlu2 %1084 }
 0x629   : > { %v1089_v6 = vsub.f32 %v1053_v1, %v1085_v0  ;;  %v1322_v1 = vld [vmem:[%s2325_s18 + $0x18] sm:$0xff]  ;;  %s2328_s18 = sld [smem:[#allocation11_spill]] }
 0x62a   : > { %1341 = vmatpush.msrb.mxu2 %v1322_v1  ;;  %v1456_v1 = vld [vmem:[%s2049_s17 + $0x38] sm:$0xff] }
 0x62b   : > { %v1091_v19 = vmul.f32 1.442695, %v1089_v6 }
 0x62c   : > { %1342 = vmatpush.msrb.mxu2 %v1321_v3 }
 0x62d   : > { %1815 = vpow2.f32 %v1091_v19 }
 0x62e   : > { %1343 = vmatpush.msrb.mxu2 %v1320_v5 }
 0x62f   : > { %v1218_v29 = vpop.xlane.xlu0 %1217 }
 0x630   : > { %v1088_v20 = vpop.xlane.xlu2 %1087  ;;  %v1215_v21 = vpop.xlane.xlu1 %1214  ;;  %v1220_v40 = vsub.f32 %v1211_v10, %v1218_v29  ;;  %1344 = vmatpush.msrb.mxu2 %v1319_v7  ;;  %v1454_v7 = vld [vmem:[%s2049_s17 + $0x28] sm:$0xff] }
 0x631   : > { %v1090_v22 = vsub.f32 %v1081_v8, %v1088_v20  ;;  %v1219_v23 = vsub.f32 %v1183_v13, %v1215_v21 }
 0x632   : > { %v1223_v41 = vmul.f32 1.442695, %v1220_v40 }
 0x633   : > { %v1816_v24 = vpop.eup %1815  ;;  %v1093_v25 = vmul.f32 1.442695, %v1090_v22  ;;  %v1221_v26 = vmul.f32 1.442695, %v1219_v23 }
 0x634   : > { %v1095_v27 = vsel %vm769_vm9, %v1816_v24, 0.0 }
 0x635   : > { %1817 = vpow2.f32 %v1093_v25  ;;  %1096 = vadd.xlane.f32.xlu1 %v1095_v27 }
 0x636   : > { %1819 = vpow2.f32 %v1221_v26 }
 0x638   : > { %v970_v28 = vpop.xlane.xlu2 %969 }
 0x639   : > { %1821 = vrcp.f32 %v970_v28 }
 0x63a   : > { %1823 = vpow2.f32 %v1223_v41 }
 0x63b   : > { %v1818_v30 = vpop.eup %1817 }
 0x63c   : > { %v1820_v31 = vpop.eup %1819  ;;  %v1098_v32 = vsel %vm769_vm9, %v1818_v30, 0.0 }
 0x63d   : > { %1099 = vadd.xlane.f32.xlu2 %v1098_v32  ;;  %v1225_v33 = vsel %vm769_vm9, %v1820_v31, 0.0  ;;  %v1412_v32 = vld [vmem:[%s2035_s23 + $0x10] sm:$0xff] }
 0x63e   : > { %1226 = vadd.xlane.f32.xlu0 %v1225_v33  ;;  %v1411_v33 = vld [vmem:[%s2035_s23 + $0x8] sm:$0xff] }
 0x63f   : > { %v1822_v34 = vpop.eup %1821 }
 0x640   : > { %v974_v35 = vmul.f32 %v1822_v34, %v1814_v17  ;;  %v1824_v42 = vpop.eup %1823  ;;  %v1410_v34 = vld [vmem:[%s2035_s23] sm:$0xff] }
 0x641   : > { %v1228_v43 = vsel %vm769_vm9, %v1824_v42, 0.0 }
 0x642   : > { %v1002_v36 = vpop.permute.xlu0 %1001 }
 0x643   : > { %1022 = vmatpush.msra.mxu1 %v1002_v36 }
 0x644   : > { %1714 = vmatmul.msk.f32.vlgmr.msra.gmra.mxu1 %vm769_vm9, %v974_v35 }
 0x64a   : > { %v1132_v37 = vpop.permute.xlu0 %1131 }
 0x64b   : > { %1152 = vmatpush.msrb.mxu1 %v1132_v37 }
 0x64e   : > { %1105 = vrot.lane.b32.xlu1 %v2096_v57, %s1903_s13 }
 0x652   : > { %1261 = vrot.lane.b32.xlu0 %v2099_v59, %s1904_s16 }
 0x655   : > { %1235 = vrot.lane.b32.xlu2 %v2096_v57, %s1904_s16 }
 0x65d   : > { %1289 = vrot.lane.b32.xlu2 %v998_v60, %s1905_s19 }
 0x678   : > { %1229 = vadd.xlane.f32.xlu1 %v1228_v43 }
 0x6a8   : > { %v1097_v45 = vpop.xlane.xlu1 %1096 }
 0x6b0   : > { %v1100_v44 = vpop.xlane.xlu2 %1099 }
 0x6b1   : > { %1825 = vrcp.f32 %v1100_v44  ;;  %v1227_v59 = vpop.xlane.xlu0 %1226 }
 0x6b2   : > { %1827 = vrcp.f32 %v1097_v45 }
 0x6b3   : > { %1829 = vrcp.f32 %v1227_v59 }
 0x6b7   : > { %v1826_v46 = vpop.eup %1825 }
 0x6b8   : > { %v1104_v47 = vmul.f32 %v1826_v46, %v1818_v30  ;;  %v1828_v57 = vpop.eup %1827  ;;  %v1236_v50 = vpop.permute.xlu2 %1235  ;;  %v1791_v46 = vld [vmem:[%s2326_s25] ss:$0 sm:$0xff] }
 0x6b9   : > { %v1103_v49 = vmul.f32 %v1828_v57, %v1816_v24  ;;  %v1830_v52 = vpop.eup %1829  ;;  %v1792_v57 = vld [vmem:[%s626_s27] ss:$0 sm:$0xff] }
 0x6ba   : > { %1720 = vmatmul.msk.f32.vlgmr.msrb.gmra.mxu1 %vm769_vm9, %v1104_v47  ;;  %v1233_v53 = vmul.f32 %v1830_v52, %v1820_v31  ;;  %v1413_v31 = vld [vmem:[%s2035_s23 + $0x18] sm:$0xff]  ;;  %v1462_v52 = vld [vmem:[%s2049_s17 + $0x68] sm:$0xff] }
 0x6bb   : > { %1436 = vmatpush.msrb.mxu0 %v1413_v31 }
 0x6bd   : > { %1437 = vmatpush.msrb.mxu0 %v1412_v32 }
 0x6bf   : > { %1438 = vmatpush.msrb.mxu0 %v1411_v33 }
 0x6c0   : > { %v1106_v48 = vpop.permute.xlu1 %1105  ;;  %v1290_v8 = vpop.permute.xlu2 %1289 }
 0x6c1   : > { %1126 = vmatpush.msra.mxu3 %v1106_v48  ;;  %v1024_v60 = vpop.f32.mrf.mxu1  ;;  %v1311_v9 = vsel %vm769_vm9, %v2153_v38, %v1290_v8  ;;  %1439 = vmatpush.msrb.mxu0 %v1410_v34 }
 0x6c2   : > { %1719 = vmatmul.msk.f32.vlgmr.msra.gmra.mxu3 %vm769_vm9, %v1103_v49 }
 0x6c3   : > { %1256 = vmatpush.msrb.mxu3 %v1236_v50  ;;  %v1464_v50 = vld [vmem:[%s2049_s17 + $0x78] sm:$0xff] }
 0x6c4   : > { %v1262_v51 = vpop.permute.xlu0 %1261 }
 0x6c5   : > { %1282 = vmatpush.msra.mxu1 %v1262_v51  ;;  %v1463_v51 = vld [vmem:[%s2049_s17 + $0x70] sm:$0xff]  ;;  %1469 = vmatpush.msra.mxu3 %v1464_v50 }
 0x6c7   : > { %1470 = vmatpush.msra.mxu3 %v1463_v51 }
 0x6c9   : > { %1471 = vmatpush.msra.mxu3 %v1462_v52 }
 0x6ca   : > { %1725 = vmatmul.msk.f32.vlgmr.msrb.gmra.mxu3 %vm769_vm9, %v1233_v53 }
 0x6eb   : > { %v1230_v54 = vpop.xlane.xlu1 %1229 }
 0x6ec   : > { %1831 = vrcp.f32 %v1230_v54 }
 0x6f2   : > { %v1832_v55 = vpop.eup %1831 }
 0x6f3   : > { %v1234_v56 = vmul.f32 %v1832_v55, %v1824_v42  ;;  %v1461_v55 = vld [vmem:[%s2049_s17 + $0x60] sm:$0xff] }
 0x6f4   : > { %1472 = vmatpush.msra.mxu3 %v1461_v55 }
 0x6f5   : > { %1726 = vmatmul.msk.f32.vlgmr.msra.gmra.mxu1 %vm769_vm9, %v1234_v56 }
 0x737   : > { %v1154_v62 = vpop.f32.mrf.mxu1 }
 0x745   : > { %v1128_v58 = vpop.f32.mrf.mxu3 }
 0x746   : > { %1297 = vrot.lane.b32.xlu0 %v1128_v58, %s1906_s20  ;;  %v1460_v58 = vld [vmem:[%s2049_s17 + $0x58] sm:$0xff] }
 0x747   : > { %1473 = vmatpush.msra.mxu3 %v1460_v58 }
 0x74d   : > { %v1258_v61 = vpop.f32.mrf.mxu3 }
 0x74e   : > { %1291 = vrot.lane.b32.xlu0 %v1024_v60, %s1905_s19  ;;  %1305 = vrot.lane.b32.xlu2 %v1258_v61, %s1907_s21  ;;  %v1459_v60 = vld [vmem:[%s2049_s17 + $0x50] sm:$0xff]  ;;  %v1458_v61 = vld [vmem:[%s2049_s17 + $0x48] sm:$0xff] }
 0x74f   : > { %1474 = vmatpush.msra.mxu3 %v1459_v60 }
 0x751   : > { %1475 = vmatpush.msra.mxu3 %v1458_v61 }
 0x756   : > { %1299 = vrot.lane.b32.xlu2 %v1154_v62, %s1906_s20  ;;  %v1457_v62 = vld [vmem:[%s2049_s17 + $0x40] sm:$0xff]  ;;  %s1506_s20 = sshll.u32 %s2328_s18, 4  ;;  %s1507_s20 = int_to_ptr.hbm [resolvable:$true] %s1506_s20 }
 0x757   : > { %1476 = vmatpush.msra.mxu3 %v1457_v62 }
 0x759   : > { %1477 = vmatpush.msra.mxu3 %v1456_v1 }
 0x772   : > { %v1284_v63 = vpop.f32.mrf.mxu1 }
 0x773   : > { %1307 = vrot.lane.b32.xlu0 %v1284_v63, %s1907_s21  ;;  %s2329_s21 = sadd.s32 4294967295, %s2327_s14  }
 0x774   : > { %p1743_p6 = scmp.eq.s32.totalorder %s2329_s21, 1 }
 0x7a8   : > { %v1306_v11 = vpop.permute.xlu2 %1305 }
 0x7b0   : > { %v1300_v17 = vpop.permute.xlu2 %1299 }
 0x7b8   : > { %v1298_v10 = vpop.permute.xlu0 %1297 }
 0x7b9   : > { %v1314_v13 = vsel %vm1313_vm10, %v1311_v9, %v1298_v10  ;;  %v1453_v9 = vld [vmem:[%s2049_s17 + $0x20] sm:$0xff] }
 0x7ba   : > { %v1317_v14 = vsel %vm1316_vm11, %v1314_v13, %v1306_v11  ;;  %v1452_v11 = vld [vmem:[%s2049_s17 + $0x18] sm:$0xff] }
 0x7bb   : > { %1727 = vmatmul.msk.f32.vlgmr.msrb.gmra.mxu2 %vm665_vm1, %v1317_v14 }
 0x7c0   : > { %v1292_v15 = vpop.permute.xlu0 %1291 }
 0x7c1   : > { %v1312_v16 = vsel %vm769_vm9, %v2155_v39, %v1292_v15 }
 0x7c2   : > { %v1315_v0 = vsel %vm1313_vm10, %v1312_v16, %v1300_v17 }
 0x7e5   : > { %v1308_v18 = vpop.permute.xlu0 %1307 }
 0x7e6   : > { %v1318_v6 = vsel %vm1316_vm11, %v1315_v0, %v1308_v18  ;;  %v1451_v18 = vld [vmem:[%s2049_s17 + $0x10] sm:$0xff]  ;;  %v1450_v0 = vld [vmem:[%s2049_s17 + $0x8] sm:$0xff] }
 0x7e7   : > { %1728 = vmatmul.msk.f32.gmra.mxu2 %vm665_vm1, %v1318_v6  ;;  %v1449_v6 = vld [vmem:[%s2049_s17] sm:$0xff] }
 0x83e   : > { %v1346_v19 = vpop.f32.mrf.mxu2 }
 0x83f   : > { %v2213_v20 = vadd.f32 %v1346_v19, %v2057_v2  ;;  %v1793_v19 = vld [vmem:[%s634_s4] ss:$0 sm:$0xff]  ;;  %s1908_s4 = smov [#allocation2]  }
 0x841   : > { %v1356_v38 = vsel %vm665_vm1, %v2213_v20, 0.0 }
 0x842   : > { %1357 = vadd.xlane.f32.xlu2 %v1356_v38 }
 0x86a   : > { %v1349_v21 = vpop.f32.mrf.mxu2 }
 0x86b   : > { %v2218_v22 = vadd.f32 %v1349_v21, %v2061_v4 }
 0x86d   : > { %v1359_v39 = vsel %vm665_vm1, %v2218_v22, 0.0 }
 0x86e   : > { %1360 = vadd.xlane.f32.xlu0 %v1359_v39 }
 0x8b5   : > { %v1358_v23 = vpop.xlane.xlu2 %1357 }
 0x8b6   : > { %v1362_v24 = vmul.f32 %v1358_v23, %v2065_v12 }
 0x8b8   : > { %v1364_v2 = vsub.f32 %v2213_v20, %v1362_v24 }
 0x8ba   : > { %v1366_v25 = vmul.f32 %v1364_v2, %v1364_v2 }
 0x8bc   : > { %v1368_v26 = vsel %vm665_vm1, %v1366_v25, 0.0  ;;  %v1794_v25 = vld [vmem:[%s642_s26] ss:$0 sm:$0xff]  ;;  %s1909_s26 = smov 128  }
 0x8bd   : > { %1369 = vadd.xlane.f32.xlu1 %v1368_v26 }
 0x8e1   : > { %v1361_v27 = vpop.xlane.xlu0 %1360 }
 0x8e2   : > { %v1363_v4 = vmul.f32 %v1361_v27, %v2065_v12 }
 0x8e4   : > { %v2227_v28 = vsub.f32 %v2218_v22, %v1363_v4 }
 0x8e6   : > { %v1367_v29 = vmul.f32 %v2227_v28, %v2227_v28 }
 0x8e8   : > { %v1371_v30 = vsel %vm665_vm1, %v1367_v29, 0.0 }
 0x8e9   : > { %1372 = vadd.xlane.f32.xlu1 %v1371_v30 }
 0x930   : > { %v1370_v35 = vpop.xlane.xlu1 %1369 }
 0x931   : > { %v1374_v36 = vmul.f32 %v1370_v35, %v2065_v12 }
 0x933   : > { %v1376_v37 = vadd.f32 1e-05, %v1374_v36 }
 0x935   : > { %1833 = vrsqrt.f32 %v1376_v37  ;;  %vm1384_vm13 = vweird.f32 %v1376_v37 }
 0x93b   : > { %v1834_v40 = vpop.eup %1833 }
 0x93c   : > { %v1379_v41 = vmul.f32 %v1834_v40, %v1376_v37  ;;  %vm1385_vm12 = vweird.f32 %v1834_v40 }
 0x93d   : > { %vm1386_vm14 = vmor %vm1384_vm13, %vm1385_vm12 }
 0x93e   : > { %v1380_v42 = vmul.f32 %v1834_v40, %v1379_v41 }
 0x940   : > { %v1381_v43 = vmul.f32 0.5, %v1380_v42 }
 0x942   : > { %v1382_v44 = vsub.f32 1.5, %v1381_v43 }
 0x944   : > { %v1383_v45 = vmul.f32 %v1834_v40, %v1382_v44 }
 0x946   : > { %v1387_v47 = vsel %vm1386_vm14, %v1834_v40, %v1383_v45 }
 0x947   : > { %v1398_v59 = vmul.f32 %v1387_v47, %v1364_v2 }
 0x949   : > { %v1403_v48 = vmul.f32 %v1791_v46, %v1398_v59 }
 0x94b   : > { %v1408_v49 = vadd.f32 %v1792_v57, %v1403_v48 }
 0x94d   : > { %1729 = vmatmul.msk.f32.vlgmr.msrb.gmra.mxu0 %vm665_vm1, %v1408_v49 }
 0x95c   : > { %v1373_v53 = vpop.xlane.xlu1 %1372 }
 0x95d   : > { %v1375_v54 = vmul.f32 %v1373_v53, %v2065_v12  ;;  %v1455_v12 = vld [vmem:[%s2049_s17 + $0x30] sm:$0xff]  ;;  %s1504_s17 = sshll.u32 %s1908_s4, 4  ;;  %s1505_s17 = int_to_ptr.vmem [resolvable:$true] %s1504_s17 }
 0x95e   : > { %1478 = vmatpush.msra.mxu3 %v1455_v12 }
 0x95f   : > { %v1377_v56 = vadd.f32 1e-05, %v1375_v54 }
 0x960   : > { %1479 = vmatpush.msra.mxu3 %v1454_v7 }
 0x961   : > { %1835 = vrsqrt.f32 %v1377_v56  ;;  %vm1394_vm0 = vweird.f32 %v1377_v56 }
 0x962   : > { %1480 = vmatpush.msra.mxu3 %v1453_v9 }
 0x964   : > { %1481 = vmatpush.msra.mxu3 %v1452_v11 }
 0x966   : > { %1482 = vmatpush.msra.mxu3 %v1451_v18 }
 0x967   : > { %v1836_v63 = vpop.eup %1835 }
 0x968   : > { %v1389_v3 = vmul.f32 %v1836_v63, %v1377_v56  ;;  %vm1395_vm15 = vweird.f32 %v1836_v63  ;;  %1483 = vmatpush.msra.mxu3 %v1450_v0 }
 0x969   : > { %vm1396_vm2 = vmor %vm1394_vm0, %vm1395_vm15 }
 0x96a   : > { %v1390_v5 = vmul.f32 %v1836_v63, %v1389_v3  ;;  %1484 = vmatpush.msra.mxu3 %v1449_v6 }
 0x96c   : > { %v1391_v8 = vmul.f32 0.5, %v1390_v5 }
 0x96e   : > { %v1392_v10 = vsub.f32 1.5, %v1391_v8 }
 0x970   : > { %v1393_v13 = vmul.f32 %v1836_v63, %v1392_v10 }
 0x972   : > { %v1397_v14 = vsel %vm1396_vm2, %v1836_v63, %v1393_v13 }
 0x973   : > { %v1399_v15 = vmul.f32 %v1397_v14, %v2227_v28 }
 0x975   : > { %v1404_v16 = vmul.f32 %v1791_v46, %v1399_v15 }
 0x977   : > { %v1409_v17 = vadd.f32 %v1792_v57, %v1404_v16 }
 0x979   : > { %1730 = vmatmul.msk.f32.gmra.mxu0 %vm665_vm1, %v1409_v17 }
 0x9ca   : > { %v1441_v38 = vpop.f32.mrf.mxu0 }
 0x9cb   : > { %v1442_v21 = vadd.f32 %v1793_v19, %v1441_v38 }
 0x9cd   : > { %v1447_v39 = vmax.f32 %v1442_v21, 0.0 }
 0x9cf   : > { %1485 = vmatmul.f32.vlgmr.msra.gmra.mxu3 %v1447_v39 }
 0x9f6   : > { %v1444_v23 = vpop.f32.mrf.mxu0 }
 0x9f7   : > { %v1445_v24 = vadd.f32 %v1793_v19, %v1444_v23 }
 0x9f9   : > { %v1448_v2 = vmax.f32 %v1445_v24, 0.0 }
 0x9fb   : > { %1488 = vmatmul.f32.gmra.mxu3 %v1448_v2 }
 0xa52   : > { %v1486_v26 = vpop.f32.mrf.mxu3 }
 0xa53   : > { %v1487_v27 = vadd.f32 %v1794_v25, %v1486_v26 }
 0xa55   : > { %v1492_v4 = vadd.f32 %v1487_v27, %v2213_v20 }
 0xa57   : > { %1494 = vst.msk [vmem:[#allocation2] sm:$0xff] %vm665_vm1, %v1492_v4 }
 0xa7e   : > { %v1489_v28 = vpop.f32.mrf.mxu3 }
 0xa7f   : > { %v1490_v29 = vadd.f32 %v1794_v25, %v1489_v28 }
 0xa81   : > { %v1493_v30 = vadd.f32 %v1490_v29, %v2218_v22 }
 0xa83   : > { %1495 = vst.msk [vmem:[#allocation2 + $0x8] sm:$0xff] %vm665_vm1, %v1493_v30 }
 0xa84   : > { %1740 = dma.vmem_to_hbm [thread:$0]  (%p1743_p6), %s1505_s17, 256, %s1507_s20, [#allocation3], %s1909_s26, %s1909_s26, %s1905_s19  }
 0xa85   : > { %1878 = dma.done.wait (%p1743_p6), [#allocation3], 256  }
 0xa86   : > { %1880 = vsyncadd (%p1743_p6), [#allocation3], 4294967040 }
 0xa87 PF: > { %s2330_s30 = sld [smem:[#allocation6_spill]] }
 0xa88   : > { %s2331_s25 = sld [smem:[#allocation5_spill]] }
 0xa89   : > { %s2332_s26 = sld [smem:[#allocation7_spill]] }
 0xa8d   : > { %s24_s27 = sadd.s32 1, %s2330_s30  }
 0xa8e   : > { %p21_p7 = scmp.ge.s32.totalorder %s24_s27, 4  }
 0xa90   :  { %23 = sbr.rel (!%p21_p7) target bundleno = 6 (0x6), region = 140 }
 0xa95   :  { %1523 = vsyncpa [#allocation3], 1 }
 0xa96   :  { %1525 = vsyncpa [#allocation3 + $0x1], 1 }

</bundles_post_ra>
